<compile_context>
chip_gen: v6e
topology: v6e:2x2x1
jax: 0.10.0
libtpu: 0.0.40
codegen_flags: <defaults>
</compile_context>

<pallas_src>
import jax
import jax.numpy as jnp
from jax.experimental import pallas as pl
from jax.experimental.pallas import tpu as pltpu


def _round_up(n: int, m: int) -> int:
    return ((n + m - 1) // m) * m


def affine_autoreg_kernel(x_ref, w_ref, b_ref, logp_ref, y_ref, logpy_ref):
    x = x_ref[...]                                     # (TB, D) f32
    D = x.shape[1]

    # nnet: f = x @ W + b  -> (TB, 2D). Matmul in the weight dtype (bf16) on the MXU,
    # f32 accumulation; bias add and everything downstream in f32.
    f = jnp.dot(x.astype(w_ref.dtype), w_ref[...],
                preferred_element_type=jnp.float32) + b_ref[...]

    # reshape (TB, 2, D) + split on dim 1  ==  lane split of the (TB, 2D) output.
    s_raw = f[:, :D]
    t = f[:, D:]

    # s = sigmoid(s_raw) * 0.98 + 0.01  ->  s in [0.01, 0.99]
    s = jax.nn.sigmoid(s_raw) * 0.98 + 0.01

    # y = x * s + t * (1 - s)
    y_ref[...] = (x * s + t * (1.0 - s)).astype(y_ref.dtype)

    # logpy = logp - sum_i log(s)   (safe_log's clamp(min=1e-22) is a no-op: s >= 0.01)
    logdet = jnp.sum(jnp.log(s), axis=1, keepdims=True)   # (TB, 1)
    logpy_ref[...] = logp_ref[...] - logdet


def affine_autoregressive_forward(x, w, b, logp, *, tb=256):
    """x: (B, D) f32, w: (D, 2D) bf16/f32, b: (1, 2D) f32, logp: (B, 1) f32.

    Returns (y, logpy) with y: (B, D) f32, logpy: (B, 1) f32.
    """
    B, D = x.shape
    assert w.shape == (D, 2 * D) and b.shape == (1, 2 * D) and logp.shape == (B, 1)

    # Batch tile: >=256 rows feeds the 256-row MXU on v6e/v7x (128 on v5e); shrink for tiny B.
    tb = min(tb, _round_up(B, 8))
    Bp = _round_up(B, tb)
    if Bp != B:
        pad = Bp - B
        x = jnp.pad(x, ((0, pad), (0, 0)))
        logp = jnp.pad(logp, ((0, pad), (0, 0)))

    num_blocks = Bp // tb

    itemsize = lambda a: a.dtype.itemsize
    cost = pl.CostEstimate(
        flops=2 * Bp * D * (2 * D) + 8 * Bp * D,
        transcendentals=2 * Bp * D,                      # sigmoid + log
        bytes_accessed=(Bp * D * itemsize(x)             # x in
                        + D * 2 * D * itemsize(w)        # W in
                        + 2 * D * itemsize(b)            # b in
                        + Bp * itemsize(logp)            # logp in
                        + Bp * D * 4 + Bp * 4),          # y, logpy out
    )

    y, logpy = pl.pallas_call(
        affine_autoreg_kernel,
        out_shape=(
            jax.ShapeDtypeStruct((Bp, D), x.dtype),
            jax.ShapeDtypeStruct((Bp, 1), jnp.float32),
        ),
        grid=(num_blocks,),
        in_specs=[
            pl.BlockSpec((tb, D), lambda i: (i, 0)),          # x: streamed per batch tile
            pl.BlockSpec((D, 2 * D), lambda i: (0, 0)),       # W: index-invariant -> resident
            pl.BlockSpec((1, 2 * D), lambda i: (0, 0)),       # b: index-invariant -> resident
            pl.BlockSpec((tb, 1), lambda i: (i, 0)),          # logp
        ],
        out_specs=(
            pl.BlockSpec((tb, D), lambda i: (i, 0)),          # y (lane-dense, unmasked stores)
            pl.BlockSpec((tb, 1), lambda i: (i, 0)),          # logpy
        ),
        compiler_params=pltpu.CompilerParams(
            dimension_semantics=("parallel",),                # shard batch tiles across cores (v7x)
            vmem_limit_bytes=64 * 1024 * 1024,
        ),
        cost_estimate=cost,
    )(x, w, b, logp)

    return y[:B], logpy[:B]


def reference_forward(x, w, b, logp):
    """Pure-JAX reference matching the PyTorch module semantics (same bf16-weight Linear)."""
    B, D = x.shape
    f = jnp.dot(x.astype(w.dtype), w, preferred_element_type=jnp.float32) + b   # (B, 2D)
    f = f.reshape(B, 2, D)
    s_raw, t = f[:, 0, :], f[:, 1, :]
    s = jax.nn.sigmoid(s_raw) * 0.98 + 0.01
    y = x * s + t * (1.0 - s)
    logdet = jnp.sum(jnp.log(jnp.clip(s, 1e-22)), axis=1, keepdims=True)
    return y, logp - logdet


if __name__ == "__main__":
    # D multiple of 128 keeps the s/t lane split a zero-cost view; B spans two batch tiles.
    B, D = 512, 128

    key = jax.random.PRNGKey(0)
    kx, kw, kb, kl = jax.random.split(key, 4)

    x = jax.random.normal(kx, (B, D), dtype=jnp.float32)
    # nnet = Linear(D, 2D); weight stored transposed (D, 2D) and in bf16 for the MXU path.
    w = (jax.random.normal(kw, (D, 2 * D), dtype=jnp.float32) / jnp.sqrt(D)).astype(jnp.bfloat16)
    b = jax.random.normal(kb, (1, 2 * D), dtype=jnp.float32) * 0.01
    logp = jax.random.normal(kl, (B, 1), dtype=jnp.float32)

    y, logpy = affine_autoregressive_forward(x, w, b, logp, tb=256)
    jax.block_until_ready((y, logpy))

    y_ref, logpy_ref = reference_forward(x, w, b, logp)
    assert y.shape == (B, D) and logpy.shape == (B, 1)
    assert jnp.allclose(y, y_ref, atol=2e-3, rtol=2e-3), "y mismatch"
    assert jnp.allclose(logpy, logpy_ref, atol=2e-2, rtol=2e-3), "logpy mismatch"

    print("KERNEL_OK")
</pallas_src>

<mosaic_0001>
module attributes {stable_mosaic.version = 11 : i64} {
  func.func @affine_autoreg_kernel(%arg0: i32, %arg1: memref<256x128xf32, #tpu.memory_space<vmem>>, %arg2: memref<128x256xbf16, #tpu.memory_space<vmem>>, %arg3: memref<1x256xf32, #tpu.memory_space<vmem>>, %arg4: memref<256x1xf32, #tpu.memory_space<vmem>>, %arg5: memref<256x128xf32, #tpu.memory_space<vmem>>, %arg6: memref<256x1xf32, #tpu.memory_space<vmem>>) attributes {dimension_semantics = [#tpu.dimension_semantics<parallel>], iteration_bounds = array<i64: 2>, scalar_prefetch = 0 : i64, scratch_operands = 0 : i64, tpu.core_type = #tpu.core_type<tc>, window_params = [{transform_indices = @transform_0, window_bounds = array<i64: 256, 128>}, {pipeline_mode = #tpu.pipeline_mode<synchronous>, transform_indices = @transform_1, window_bounds = array<i64: 128, 256>}, {pipeline_mode = #tpu.pipeline_mode<synchronous>, transform_indices = @transform_2, window_bounds = array<i64: 1, 256>}, {transform_indices = @transform_3, window_bounds = array<i64: 256, 1>}, {transform_indices = @transform_4, window_bounds = array<i64: 256, 128>}, {transform_indices = @transform_5, window_bounds = array<i64: 256, 1>}]} {
    %c0 = arith.constant 0 : index
    %c0_0 = arith.constant 0 : index
    %0 = vector.load %arg1[%c0, %c0_0] : memref<256x128xf32, #tpu.memory_space<vmem>>, vector<256x128xf32>
    %1 = arith.truncf %0 : vector<256x128xf32> to vector<256x128xbf16>
    %c0_1 = arith.constant 0 : index
    %c0_2 = arith.constant 0 : index
    %2 = vector.load %arg2[%c0_1, %c0_2] : memref<128x256xbf16, #tpu.memory_space<vmem>>, vector<128x256xbf16>
    %cst = arith.constant dense<0.000000e+00> : vector<256x256xf32>
    %3 = tpu.matmul %1, %2, %cst {dimension_numbers = #tpu.dot_dimension_numbers<[1], [0], [0], [1], [0, 0, 1, 1], [], []>} : vector<256x128xbf16>, vector<128x256xbf16>, vector<256x256xf32> -> vector<256x256xf32>
    %c0_3 = arith.constant 0 : index
    %c0_4 = arith.constant 0 : index
    %4 = vector.load %arg3[%c0_3, %c0_4] : memref<1x256xf32, #tpu.memory_space<vmem>>, vector<1x256xf32>
    %5 = vector.broadcast %4 : vector<1x256xf32> to vector<256x256xf32>
    %6 = arith.addf %3, %5 : vector<256x256xf32>
    %7 = vector.extract_strided_slice %6 {offsets = [0, 0], sizes = [256, 128], strides = [1, 1]} : vector<256x256xf32> to vector<256x128xf32>
    %8 = vector.extract_strided_slice %6 {offsets = [0, 128], sizes = [256, 128], strides = [1, 1]} : vector<256x256xf32> to vector<256x128xf32>
    %9 = arith.negf %7 : vector<256x128xf32>
    %10 = math.exp %9 : vector<256x128xf32>
    %cst_5 = arith.constant 1.000000e+00 : f32
    %11 = vector.broadcast %cst_5 : f32 to vector<256x128xf32>
    %12 = arith.addf %11, %10 : vector<256x128xf32>
    %13 = arith.divf %11, %12 : vector<256x128xf32>
    %cst_6 = arith.constant 9.800000e-01 : f32
    %14 = vector.broadcast %cst_6 : f32 to vector<256x128xf32>
    %15 = arith.mulf %13, %14 : vector<256x128xf32>
    %cst_7 = arith.constant 0.00999999977 : f32
    %16 = vector.broadcast %cst_7 : f32 to vector<256x128xf32>
    %17 = arith.addf %15, %16 : vector<256x128xf32>
    %18 = arith.mulf %0, %17 : vector<256x128xf32>
    %cst_8 = arith.constant 1.000000e+00 : f32
    %19 = vector.broadcast %cst_8 : f32 to vector<256x128xf32>
    %20 = arith.subf %19, %17 : vector<256x128xf32>
    %21 = arith.mulf %8, %20 : vector<256x128xf32>
    %22 = arith.addf %18, %21 : vector<256x128xf32>
    %c0_9 = arith.constant 0 : index
    %c0_10 = arith.constant 0 : index
    %23 = vector.load %arg5[%c0_9, %c0_10] : memref<256x128xf32, #tpu.memory_space<vmem>>, vector<256x128xf32>
    tpu.vector_store %arg5[%c0_9, %c0_10], %22 {strides = array<i32>} : memref<256x128xf32, #tpu.memory_space<vmem>>, vector<256x128xf32>,
    %24 = math.log %17 : vector<256x128xf32>
    %cst_11 = arith.constant dense<0.000000e+00> : vector<256xf32>
    %25 = vector.multi_reduction <add>, %24, %cst_11 [1] : vector<256x128xf32> to vector<256xf32>
    %26 = vector.shape_cast %25 : vector<256xf32> to vector<256x1xf32>
    %c0_12 = arith.constant 0 : index
    %c0_13 = arith.constant 0 : index
    %27 = vector.load %arg4[%c0_12, %c0_13] : memref<256x1xf32, #tpu.memory_space<vmem>>, vector<256x1xf32>
    %28 = arith.subf %27, %26 : vector<256x1xf32>
    %c0_14 = arith.constant 0 : index
    %c0_15 = arith.constant 0 : index
    %29 = vector.load %arg6[%c0_14, %c0_15] : memref<256x1xf32, #tpu.memory_space<vmem>>, vector<256x1xf32>
    tpu.vector_store %arg6[%c0_14, %c0_15], %28 {strides = array<i32>} : memref<256x1xf32, #tpu.memory_space<vmem>>, vector<256x1xf32>,
    return
  }
  func.func @transform_0(%arg0: i32) -> (i32, i32) {
    %c0_i32 = arith.constant 0 : i32
    %c0_i32_0 = arith.constant 0 : i32
    return %arg0, %c0_i32 : i32, i32
  }
  func.func @transform_1(%arg0: i32) -> (i32, i32) {
    %c0_i32 = arith.constant 0 : i32
    %c0_i32_0 = arith.constant 0 : i32
    %c0_i32_1 = arith.constant 0 : i32
    return %c0_i32, %c0_i32_0 : i32, i32
  }
  func.func @transform_2(%arg0: i32) -> (i32, i32) {
    %c0_i32 = arith.constant 0 : i32
    %c0_i32_0 = arith.constant 0 : i32
    %c0_i32_1 = arith.constant 0 : i32
    return %c0_i32, %c0_i32_0 : i32, i32
  }
  func.func @transform_3(%arg0: i32) -> (i32, i32) {
    %c0_i32 = arith.constant 0 : i32
    %c0_i32_0 = arith.constant 0 : i32
    return %arg0, %c0_i32 : i32, i32
  }
  func.func @transform_4(%arg0: i32) -> (i32, i32) {
    %c0_i32 = arith.constant 0 : i32
    %c0_i32_0 = arith.constant 0 : i32
    return %arg0, %c0_i32 : i32, i32
  }
  func.func @transform_5(%arg0: i32) -> (i32, i32) {
    %c0_i32 = arith.constant 0 : i32
    %c0_i32_0 = arith.constant 0 : i32
    return %arg0, %c0_i32 : i32, i32
  }
}

</mosaic_0001>

<bundles_post_ra>
// kernel: tpu_custom_call.1
= control target key start
LH: loop header
LB: loop body
LE: loop exit
PB: predicated region body
PF: predicated region fallthrough
CT: control target
= control target key end

     0   :  { %11 = vsyncpa [#allocation3], 0  ;;  %s2729_s0 = inlined_call_operand.vmem [shape: f32[512,128], index: 0, kind: input, shape index: {}]   ;;  %s2730_s1 = inlined_call_operand.hbm [shape: bf16[128,256], index: 1, kind: input, shape index: {}]   ;;  %s2731_s2 = inlined_call_operand.vmem [shape: f32[1,256], index: 2, kind: input, shape index: {}]   ;;  %s2732_s3 = inlined_call_operand.vmem [shape: f32[512,1], index: 3, kind: input, shape index: {}]   ;;  %s2733_s4 = inlined_call_operand.hbm [shape: f32[512,128], index: 4, kind: output, shape index: {0}]   ;;  %s2734_s5 = inlined_call_operand.vmem [shape: f32[512,1], index: 5, kind: output, shape index: {1}]  }
   0x1   :  { %12 = vsyncpa [#allocation4], 0 }
   0x2   :  { %14 = vsyncpa [#allocation4 + $0x1], 0  ;;  %s1893_s18 = smov 0   ;;  %s1895_s19 = smov 0  }
   0x3   :  { %s1897_s20 = smov 0   ;;  %s1899_s21 = smov 0  }
   0x4 LB: > { %s1914_s22 = sadd.s32 4294967295, %s1854_s21   ;;  %s1402_s23 = sadd.s32 4294967294, %s1854_s21   ;;  %s1854_s21 = sphi %s1899_s21, %s2766_s21   ;;  %s1850_s20 = sphi %s1897_s20, %s2765_s20   ;;  %s1846_s19 = sphi %s1895_s19, %s2764_s19   ;;  %s1842_s18 = sphi %s1893_s18, %s2763_s18  }
   0x5   : > { %s1918_s24 = sadd.s32 1, %s1854_s21   ;;  %s121_s25 = sadd.s32 1, %s1850_s20 }
   0x6   : > { %s118_s26 = ssub.s32 %s1854_s21, %s1918_s24  ;;  %p131_p0 = scmp.ne.s32.totalorder %s1850_s20, %s1846_s19 }
   0x7   : > { %p119_p1 = scmp.eq.s32.totalorder %s118_s26, 0  ;;  %p132_p2 = scmp.eq.s32.totalorder %s1914_s22, 1 }
   0x8   : > { %p137_p3 = scmp.ne.s32.totalorder %s1846_s19, %s1842_s18  ;;  %p138_p4 = scmp.eq.s32.totalorder %s1402_s23, 1 }
   0x9   : > { %s1929_s27 = scalar_select %p119_p1, %s1850_s20, %s121_s25  }
   0xa   : > { %p1931_p5 = por %p132_p2, %p131_p0  ;;  %p1935_p6 = por %p138_p4, %p137_p3 }
   0xb   : > { %p1403_p7 = scmp.ge.s32.totalorder %s1854_s21, 1  ;;  %p171_p8 = scmp.lt.s32.totalorder %s1854_s21, 3 }
   0xc   : > { %s2744_s29 = scalar_select %p1935_p6, 1, 0 }
   0xd   : > { %p1499_p9 = scmp.eq.s32.totalorder %s1914_s22, 0  ;;  %p1942_p10 = pnand %p1403_p7, %p171_p8 }
   0xe   : > { %s1856_s6 = smov [#allocation2]  }
   0xf   : > { %s183_s7 = sshll.u32 %s1856_s6, 4  ;;  %p1491_p11 = pneg %p1942_p10  ;;  %s184_s7 = int_to_ptr.vmem [resolvable:$true] %s183_s7 }
  0x10   : > { %s1775_s8 = scalar_lea.vmem %s184_s7, 2048  ;;  %p1783_p3 = scmp.lt.s32.totalorder %s184_s7, %s184_s7 }
  0x11   : > { %p1492_p12 = pnand %p1499_p9, %p1491_p11  ;;  %p1776_p0 = scmp.ne.s32.totalorder %s184_s7, %s1775_s8 }
  0x12   : > { %p1784_p4 = scmp.lt.s32.totalorder %s1775_s8, %s1775_s8 }
  0x13   : > { %p1766_p13 = pneg %p1492_p12 }
  0x14   : > { %p1785_p6 = por %p1784_p4, %p1783_p3 }
  0x15   : > { %p1778_p1 = pnand %p1776_p0, %p1766_p13 }
  0x17   : > { %p1779_p2 = pneg %p1778_p1 }
  0x19   : > { %p1786_p7 = pnand %p1785_p6, %p1779_p2 }
  0x1b   : > { %1789 = shalt.err (!%p1786_p7)
}
  0x1c   : > { %s1857_s9 = smov 128   ;;  %s1858_s10 = smov 8  }
  0x1d   : > { %1494 = dma.hbm_to_vmem [thread:$0]  (!%p1492_p12), %s2730_s1, 2048, %s184_s7, [#allocation3], %s1857_s9, %s1857_s9, %s1858_s10  }
  0x1e   : > { %220 = sbr.rel (%p1942_p10) target bundleno = 577 (0x241), region = 36 }
  0x23   : > { %1833 = dma.done.wait (%p1499_p9), [#allocation3], 2048  }
  0x24   : > { %1835 = vsyncadd (%p1499_p9), [#allocation3], 4294965248  ;;  %v1859_v0 = vmov 0   ;;  %v1540_v1 = vld [vmem:[#allocation2 + $0x74] ss:$8 sps:$4 sm:$0xff]   ;;  %s1409_s13 = sshll.u32 %s1914_s22, 5 }
  0x25   : > { %466 = vmatprep.mubr.bf16.mxu0 %v1859_v0  ;;  %546 = vmatprep.mubr.bf16.mxu1 %v1859_v0  ;;  %v1542_v2 = vld [vmem:[#allocation2 + $0x70] ss:$8 sps:$4 sm:$0xff]   ;;  %v1543_v3 = vld [vmem:[#allocation2 + $0x64] ss:$8 sps:$4 sm:$0xff]   ;;  %v1545_v4 = vld [vmem:[#allocation2 + $0x60] ss:$8 sps:$4 sm:$0xff]  }
  0x26   : > { %434 = vmatprep.subr.bf16.mxu0 %v1540_v1  ;;  %1469 = vmatprep.subr.bf16.mxu1 %v1540_v1  ;;  %v1546_v5 = vld [vmem:[#allocation2 + $0x54] ss:$8 sps:$4 sm:$0xff]   ;;  %v1548_v6 = vld [vmem:[#allocation2 + $0x50] ss:$8 sps:$4 sm:$0xff]   ;;  %v1549_v7 = vld [vmem:[#allocation2 + $0x44] ss:$8 sps:$4 sm:$0xff]  }
  0x27   : > { %435 = vmatpush1.bf16.msra.mxu0 %v1542_v2  ;;  %1477 = vmatpush1.bf16.msra.mxu1 %v1542_v2  ;;  %v1551_v8 = vld [vmem:[#allocation2 + $0x40] ss:$8 sps:$4 sm:$0xff]   ;;  %v1552_v9 = vld [vmem:[#allocation2 + $0x34] ss:$8 sps:$4 sm:$0xff]   ;;  %p259_p6 = scmp.lt.s32.totalorder %s1409_s13, 63  ;;  %v344_v2 = vlaneseq  ;;  %s248_s26 = sand.u32 1, %s1846_s19  }
  0x28   : > { %436 = vmatprep.subr.bf16.mxu0 %v1543_v3  ;;  %1470 = vmatprep.subr.bf16.mxu1 %v1543_v3  ;;  %v1554_v10 = vld [vmem:[#allocation2 + $0x30] ss:$8 sps:$4 sm:$0xff]   ;;  %v1555_v11 = vld [vmem:[#allocation2 + $0x24] ss:$8 sps:$4 sm:$0xff]   ;;  %v1557_v12 = vld [vmem:[#allocation2 + $0x20] ss:$8 sps:$4 sm:$0xff]  }
  0x29   : > { %s2768_s13 = smov (!%p259_p6, %s1409_s13), 63  ;;  %v1558_v13 = vld [vmem:[#allocation2 + $0x14] ss:$8 sps:$4 sm:$0xff]   ;;  %v1560_v14 = vld [vmem:[#allocation2 + $0x10] ss:$8 sps:$4 sm:$0xff]   ;;  %v2088_v3 = vshrl.u32 %v344_v2, 7 }
  0x2a   : > { %s1962_s14 = sshll.u32 %s2768_s13, 3  ;;  %v1561_v15 = vld [vmem:[#allocation2 + $0x4] ss:$8 sps:$4 sm:$0xff]   ;;  %v1563_v16 = vld [vmem:[#allocation2] ss:$8 sps:$4 sm:$0xff]   ;;  %s2218_s30 = sshll.u32 %s248_s26, 8 }
  0x2b   : > { %437 = vmatpush1.bf16.msra.mxu0 %v1545_v4  ;;  %1478 = vmatpush1.bf16.msra.mxu1 %v1545_v4  ;;  %s1968_s17 = scalar_lea.vmem %s2729_s0, %s1962_s14  ;;  %v346_v4 = vsub.s32 0, %v2088_v3  ;;  %s2252_s6 = scalar_lea.vmem [#allocation5], %s2218_s30 }
  0x2c   : > { %438 = vmatprep.subr.bf16.mxu0 %v1546_v5  ;;  %1471 = vmatprep.subr.bf16.mxu1 %v1546_v5  ;;  %v1971_v17 = vld [vmem:[%s1968_s17] sm:$0xff]  ;;  %v1974_v18 = vld [vmem:[%s1968_s17 + $0x8] sm:$0xff]  ;;  %v1987_v23 = vld [vmem:[%s1968_s17 + $0x10] sm:$0xff]  ;;  %s1468_s7 = sshll.u32 %s1914_s22, 12  ;;  %s1287_s11 = sshll.u32 %s2252_s6, 4  ;;  %s2577_s11 = int_to_ptr.vmem [resolvable:$true] %s1287_s11 }
  0x2d   : > { %v1977_v19 = vld [vmem:[%s1968_s17 + $0x80] sm:$0xff]  ;;  %v1980_v20 = vld [vmem:[%s1968_s17 + $0x88] sm:$0xff]  ;;  %v310_v21 = vpack.c.bf16 %v1974_v18, %v1971_v17  ;;  %v1992_v24 = vld [vmem:[%s1968_s17 + $0x18] sm:$0xff]  ;;  %s2574_s10 = scalar_lea.hbm %s2733_s4, %s1468_s7  ;;  %s2581_s12 = scalar_lea.sflag [#allocation4], %s248_s26 }
  0x2e   : > { %v318_v22 = vpack.c.bf16 %v1980_v20, %v1977_v19  ;;  %v1995_v25 = vld [vmem:[%s1968_s17 + $0x90] sm:$0xff]  ;;  %v1998_v26 = vld [vmem:[%s1968_s17 + $0x98] sm:$0xff]  ;;  %v311_v27 = vpack.c.bf16 %v1992_v24, %v1987_v23  ;;  %v2005_v29 = vld [vmem:[%s1968_s17 + $0x20] sm:$0xff]  ;;  %s1790_s13 = scalar_lea.vmem %s2577_s11, 4096  ;;  %s1860_s22 = smov [#allocation5]  }
  0x2f   : > { %439 = vmatpush1.bf16.msra.mxu0 %v1548_v6  ;;  %1479 = vmatpush1.bf16.msra.mxu1 %v1548_v6  ;;  %v319_v28 = vpack.c.bf16 %v1998_v26, %v1995_v25  ;;  %v2010_v30 = vld [vmem:[%s1968_s17 + $0x28] sm:$0xff]  ;;  %v2013_v31 = vld [vmem:[%s1968_s17 + $0xa0] sm:$0xff]  ;;  %v2023_v35 = vld [vmem:[%s1968_s17 + $0x30] sm:$0xff]  ;;  %p1791_p8 = scmp.ne.s32.totalorder %s2577_s11, %s1790_s13  ;;  %s1794_s15 = sshll.u32 %s1860_s22, 4  ;;  %s1795_s15 = int_to_ptr.vmem [resolvable:$false] %s1794_s15 }
  0x30   : > { %440 = vmatprep.subr.bf16.mxu0 %v1549_v7  ;;  %1472 = vmatprep.subr.bf16.mxu1 %v1549_v7  ;;  %v2016_v32 = vld [vmem:[%s1968_s17 + $0xa8] sm:$0xff]  ;;  %v312_v33 = vpack.c.bf16 %v2010_v30, %v2005_v29  ;;  %v2028_v36 = vld [vmem:[%s1968_s17 + $0x38] sm:$0xff]  ;;  %v2031_v37 = vld [vmem:[%s1968_s17 + $0xb0] sm:$0xff]  ;;  %s1796_s16 = scalar_lea.vmem %s1795_s15, 8192  ;;  %p1797_p11 = scmp.lt.s32.totalorder %s2577_s11, %s1795_s15 }
  0x31   : > { %v320_v34 = vpack.c.bf16 %v2016_v32, %v2013_v31  ;;  %v2034_v38 = vld [vmem:[%s1968_s17 + $0xb8] sm:$0xff]  ;;  %v313_v39 = vpack.c.bf16 %v2028_v36, %v2023_v35  ;;  %v2041_v41 = vld [vmem:[%s1968_s17 + $0x40] sm:$0xff]  ;;  %v2046_v42 = vld [vmem:[%s1968_s17 + $0x48] sm:$0xff]  ;;  %p1792_p9 = pnand %p1791_p8, %p1931_p5  ;;  %p1798_p12 = scmp.lt.s32.totalorder %s1796_s16, %s1790_s13 }
  0x32   : > { %v321_v40 = vpack.c.bf16 %v2034_v38, %v2031_v37  ;;  %2746 = vst [vmem:[#allocation8_spill] sm:$0xff] %v2046_v42  ;;  %v2049_v43 = vld [vmem:[%s1968_s17 + $0xc0] sm:$0xff]  ;;  %v2052_v44 = vld [vmem:[%s1968_s17 + $0xc8] sm:$0xff]  ;;  %v314_v45 = vpack.c.bf16 %v2046_v42, %v2041_v41  ;;  %v2059_v47 = vld [vmem:[%s1968_s17 + $0x50] sm:$0xff] }
  0x33   : > { %441 = vmatpush1.bf16.msra.mxu0 %v1551_v8  ;;  %1480 = vmatpush1.bf16.msra.mxu1 %v1551_v8  ;;  %2747 = vst [vmem:[#allocation9_spill] sm:$0xff] %v2052_v44  ;;  %v322_v46 = vpack.c.bf16 %v2052_v44, %v2049_v43  ;;  %2748 = vst [vmem:[#allocation10_spill] sm:$0xff] %v2059_v47  ;;  %v2064_v48 = vld [vmem:[%s1968_s17 + $0x58] sm:$0xff]  ;;  %v2067_v49 = vld [vmem:[%s1968_s17 + $0xd0] sm:$0xff]  ;;  %p1793_p10 = pneg %p1792_p9  ;;  %p1799_p13 = por %p1798_p12, %p1797_p11 }
  0x34   : > { %442 = vmatprep.subr.bf16.mxu0 %v1552_v9  ;;  %1473 = vmatprep.subr.bf16.mxu1 %v1552_v9  ;;  %2749 = vst [vmem:[#allocation11_spill] sm:$0xff] %v2064_v48  ;;  %2750 = vst [vmem:[#allocation12_spill] sm:$0xff] %v2067_v49  ;;  %v2070_v50 = vld [vmem:[%s1968_s17 + $0xd8] sm:$0xff]  ;;  %v315_v51 = vpack.c.bf16 %v2064_v48, %v2059_v47  ;;  %v290_v53 = vld [vmem:[%s1968_s17 + $0x60] sm:$0xff] }
  0x35   : > { %2751 = vst [vmem:[#allocation13_spill] sm:$0xff] %v2070_v50  ;;  %v323_v52 = vpack.c.bf16 %v2070_v50, %v2067_v49  ;;  %v291_v54 = vld [vmem:[%s1968_s17 + $0x68] sm:$0xff]  ;;  %v306_v55 = vld [vmem:[%s1968_s17 + $0xe0] sm:$0xff]  ;;  %v292_v59 = vld [vmem:[%s1968_s17 + $0x70] sm:$0xff]  ;;  %p1800_p0 = pnand %p1799_p13, %p1793_p10 }
  0x36   : > { %v307_v56 = vld [vmem:[%s1968_s17 + $0xe8] sm:$0xff]  ;;  %v316_v57 = vpack.c.bf16 %v291_v54, %v290_v53  ;;  %v293_v60 = vld [vmem:[%s1968_s17 + $0x78] sm:$0xff]  ;;  %v308_v61 = vld [vmem:[%s1968_s17 + $0xf0] sm:$0xff] }
  0x37   : > { %443 = vmatpush1.bf16.msra.mxu0 %v1554_v10  ;;  %1481 = vmatpush1.bf16.msra.mxu1 %v1554_v10  ;;  %v324_v58 = vpack.c.bf16 %v307_v56, %v306_v55  ;;  %v309_v62 = vld [vmem:[%s1968_s17 + $0xf8] sm:$0xff]  ;;  %v317_v63 = vpack.c.bf16 %v293_v60, %v292_v59  ;;  %v2094_v5 = vld [vmem:[%s2731_s2] sm:$0x3] }
  0x38   : > { %444 = vmatprep.subr.bf16.mxu0 %v1555_v11  ;;  %1474 = vmatprep.subr.bf16.mxu1 %v1555_v11  ;;  %v325_v1 = vpack.c.bf16 %v309_v62, %v308_v61  ;;  %v2097_v6 = vrot.slane %v2094_v5, %v346_v4 }
  0x3b   : > { %445 = vmatpush1.bf16.msra.mxu0 %v1557_v12  ;;  %1482 = vmatpush1.bf16.msra.mxu1 %v1557_v12 }
  0x3c   : > { %446 = vmatprep.subr.bf16.mxu0 %v1558_v13  ;;  %1475 = vmatprep.subr.bf16.mxu1 %v1558_v13 }
  0x3f   : > { %447 = vmatpush1.bf16.msra.mxu0 %v1560_v14  ;;  %1483 = vmatpush1.bf16.msra.mxu1 %v1560_v14 }
  0x40   : > { %448 = vmatprep.subr.bf16.mxu0 %v1561_v15  ;;  %1476 = vmatprep.subr.bf16.mxu1 %v1561_v15 }
  0x43   : > { %449 = vmatpush1.bf16.msra.mxu0 %v1563_v16  ;;  %1484 = vmatpush1.bf16.msra.mxu1 %v1563_v16 }
  0x46   : > { %467 = vmatmul.mubr.bf16.vlgmr.msra.gmra.mxu0 %v310_v21  ;;  %547 = vmatmul.mubr.bf16.vlgmr.msra.gmra.mxu1 %v318_v22 }
  0x47   : > { %476 = vmatprep.mubr.bf16.mxu0 %v1859_v0  ;;  %556 = vmatprep.mubr.bf16.mxu1 %v1859_v0 }
  0x4e   : > { %477 = vmatmul.mubr.bf16.gmra.mxu0 %v311_v27  ;;  %557 = vmatmul.mubr.bf16.gmra.mxu1 %v319_v28 }
  0x4f   : > { %486 = vmatprep.mubr.bf16.mxu0 %v1859_v0  ;;  %566 = vmatprep.mubr.bf16.mxu1 %v1859_v0 }
  0x56   : > { %487 = vmatmul.mubr.bf16.gmra.mxu0 %v312_v33  ;;  %567 = vmatmul.mubr.bf16.gmra.mxu1 %v320_v34 }
  0x57   : > { %496 = vmatprep.mubr.bf16.mxu0 %v1859_v0  ;;  %576 = vmatprep.mubr.bf16.mxu1 %v1859_v0 }
  0x5e   : > { %497 = vmatmul.mubr.bf16.gmra.mxu0 %v313_v39  ;;  %577 = vmatmul.mubr.bf16.gmra.mxu1 %v321_v40 }
  0x5f   : > { %506 = vmatprep.mubr.bf16.mxu0 %v1859_v0  ;;  %586 = vmatprep.mubr.bf16.mxu1 %v1859_v0 }
  0x66   : > { %507 = vmatmul.mubr.bf16.gmra.mxu0 %v314_v45  ;;  %587 = vmatmul.mubr.bf16.gmra.mxu1 %v322_v46 }
  0x67   : > { %516 = vmatprep.mubr.bf16.mxu0 %v1859_v0  ;;  %596 = vmatprep.mubr.bf16.mxu1 %v1859_v0 }
  0x6e   : > { %517 = vmatmul.mubr.bf16.gmra.mxu0 %v315_v51  ;;  %597 = vmatmul.mubr.bf16.gmra.mxu1 %v323_v52 }
  0x6f   : > { %526 = vmatprep.mubr.bf16.mxu0 %v1859_v0  ;;  %606 = vmatprep.mubr.bf16.mxu1 %v1859_v0 }
  0x76   : > { %527 = vmatmul.mubr.bf16.gmra.mxu0 %v316_v57  ;;  %607 = vmatmul.mubr.bf16.gmra.mxu1 %v324_v58 }
  0x77   : > { %536 = vmatprep.mubr.bf16.mxu0 %v1859_v0  ;;  %616 = vmatprep.mubr.bf16.mxu1 %v1859_v0 }
  0x7e   : > { %537 = vmatmul.mubr.bf16.gmra.mxu0 %v317_v63  ;;  %617 = vmatmul.mubr.bf16.gmra.mxu1 %v325_v1 }
 0x106   : > { %v468_v0 = vpop.f32.mrf.mxu0  ;;  %v548_v7 = vpop.f32.mrf.mxu1 }
 0x107   : > { %v469_v8 = vadd.f32 %v468_v0, %v2097_v6  ;;  %v549_v9 = vadd.f32 %v548_v7, %v2097_v6 }
 0x108   : > { %v2101_v10 = vpop.f32.mrf.mxu0  ;;  %v2103_v11 = vpop.f32.mrf.mxu1 }
 0x109   : > { %v1431_v12 = vmul.f32 -1.442695, %v469_v8  ;;  %v1447_v13 = vmul.f32 -1.442695, %v549_v9 }
 0x10a   : > { %v472_v14 = vpop.f32.mrf.mxu0  ;;  %v552_v15 = vpop.f32.mrf.mxu1 }
 0x10b   : > { %1564 = vpow2.f32 %v1431_v12  ;;  %v473_v16 = vadd.f32 %v472_v14, %v2097_v6  ;;  %v553_v21 = vadd.f32 %v552_v15, %v2097_v6 }
 0x10c   : > { %1566 = vpow2.f32 %v1447_v13  ;;  %v2107_v22 = vpop.f32.mrf.mxu0  ;;  %v2109_v27 = vpop.f32.mrf.mxu1 }
 0x10d   : > { %v1432_v28 = vmul.f32 -1.442695, %v473_v16  ;;  %v1448_v33 = vmul.f32 -1.442695, %v553_v21  ;;  %v350_v21 = vsub.s32 1, %v2088_v3 }
 0x10e   : > { %v478_v34 = vpop.f32.mrf.mxu0  ;;  %v558_v39 = vpop.f32.mrf.mxu1 }
 0x10f   : > { %1568 = vpow2.f32 %v1432_v28  ;;  %v479_v40 = vadd.f32 %v478_v34, %v2097_v6  ;;  %v559_v45 = vadd.f32 %v558_v39, %v2097_v6  ;;  %v2137_v3 = vrot.slane %v2094_v5, %v350_v21 }
 0x110   : > { %1570 = vpow2.f32 %v1448_v33  ;;  %v2113_v46 = vpop.f32.mrf.mxu0  ;;  %v2115_v51 = vpop.f32.mrf.mxu1 }
 0x111   : > { %v1433_v52 = vmul.f32 -1.442695, %v479_v40  ;;  %v1449_v53 = vmul.f32 -1.442695, %v559_v45 }
 0x112   : > { %v482_v54 = vpop.f32.mrf.mxu0  ;;  %v562_v55 = vpop.f32.mrf.mxu1 }
 0x113   : > { %1572 = vpow2.f32 %v1433_v52  ;;  %v483_v56 = vadd.f32 %v482_v54, %v2097_v6  ;;  %v563_v57 = vadd.f32 %v562_v55, %v2097_v6 }
 0x114   : > { %1574 = vpow2.f32 %v1449_v53  ;;  %v2119_v58 = vpop.f32.mrf.mxu0  ;;  %v2121_v59 = vpop.f32.mrf.mxu1 }
 0x115   : > { %v1434_v60 = vmul.f32 -1.442695, %v483_v56  ;;  %v1450_v61 = vmul.f32 -1.442695, %v563_v57 }
 0x116   : > { %v488_v62 = vpop.f32.mrf.mxu0  ;;  %v568_v63 = vpop.f32.mrf.mxu1 }
 0x117   : > { %1576 = vpow2.f32 %v1434_v60  ;;  %v489_v1 = vadd.f32 %v488_v62, %v2097_v6  ;;  %v569_v2 = vadd.f32 %v568_v63, %v2097_v6 }
 0x118   : > { %v1565_v4 = vpop.eup %1564  ;;  %1578 = vpow2.f32 %v1450_v61  ;;  %v2125_v0 = vpop.f32.mrf.mxu0 }
 0x119   : > { %v2127_v7 = vpop.f32.mrf.mxu1  ;;  %v1567_v8 = vpop.eup %1566  ;;  %v723_v9 = vadd.f32 1.0, %v1565_v4  ;;  %v1435_v12 = vmul.f32 -1.442695, %v489_v1  ;;  %v1451_v14 = vmul.f32 -1.442695, %v569_v2 }
 0x11a   : > { %v739_v13 = vadd.f32 1.0, %v1567_v8  ;;  %v492_v15 = vpop.f32.mrf.mxu0 }
 0x11b   : > { %v572_v16 = vpop.f32.mrf.mxu1  ;;  %1580 = vrcp.f32 %v723_v9  ;;  %v493_v28 = vadd.f32 %v492_v15, %v2097_v6 }
 0x11c   : > { %v573_v33 = vadd.f32 %v572_v16, %v2097_v6  ;;  %v1569_v34 = vpop.eup %1568  ;;  %1582 = vrcp.f32 %v739_v13  ;;  %v2132_v39 = vpop.f32.mrf.mxu0 }
 0x11d   : > { %v2134_v40 = vpop.f32.mrf.mxu1  ;;  %v1571_v45 = vpop.eup %1570  ;;  %v724_v52 = vadd.f32 1.0, %v1569_v34  ;;  %1584 = vpow2.f32 %v1435_v12  ;;  %v1436_v53 = vmul.f32 -1.442695, %v493_v28  ;;  %v2151_v28 = vadd.f32 %v2103_v11, %v2137_v3 }
 0x11e   : > { %v740_v54 = vadd.f32 1.0, %v1571_v45  ;;  %1586 = vpow2.f32 %v1451_v14  ;;  %v1452_v55 = vmul.f32 -1.442695, %v573_v33  ;;  %v498_v56 = vpop.f32.mrf.mxu0  ;;  %v2145_v14 = vadd.f32 %v2101_v10, %v2137_v3 }
 0x11f   : > { %v578_v57 = vpop.f32.mrf.mxu1  ;;  %1588 = vrcp.f32 %v724_v52  ;;  %v499_v60 = vadd.f32 %v498_v56, %v2097_v6  ;;  %v2155_v33 = vadd.f32 %v2107_v22, %v2137_v3  ;;  %v2159_v34 = vadd.f32 %v2109_v27, %v2137_v3 }
 0x120   : > { %v579_v61 = vadd.f32 %v578_v57, %v2097_v6  ;;  %v1573_v62 = vpop.eup %1572  ;;  %1590 = vrcp.f32 %v740_v54  ;;  %v500_v63 = vpop.f32.mrf.mxu0  ;;  %v2171_v22 = vadd.f32 %v2115_v51, %v2137_v3  ;;  %v2181_v51 = vadd.f32 %v2121_v59, %v2137_v3 }
 0x121   : > { %v2141_v1 = vpop.f32.mrf.mxu1  ;;  %v1575_v2 = vpop.eup %1574  ;;  %v725_v4 = vadd.f32 1.0, %v1573_v62  ;;  %1592 = vpow2.f32 %v1436_v53  ;;  %v1437_v8 = vmul.f32 -1.442695, %v499_v60  ;;  %v2167_v53 = vadd.f32 %v2113_v46, %v2137_v3 }
 0x122   : > { %v741_v9 = vadd.f32 1.0, %v1575_v2  ;;  %1594 = vpow2.f32 %v1452_v55  ;;  %v1453_v12 = vmul.f32 -1.442695, %v579_v61  ;;  %v502_v13 = vpop.f32.mrf.mxu0  ;;  %v2175_v60 = vadd.f32 %v2119_v58, %v2137_v3 }
 0x123   : > { %v582_v5 = vpop.f32.mrf.mxu1  ;;  %1596 = vrcp.f32 %v725_v4  ;;  %v503_v15 = vadd.f32 %v502_v13, %v2097_v6  ;;  %v2185_v2 = vadd.f32 %v2125_v0, %v2137_v3  ;;  %v2189_v4 = vadd.f32 %v2127_v7, %v2137_v3 }
 0x124   : > { %v583_v16 = vadd.f32 %v582_v5, %v2097_v6  ;;  %v1577_v21 = vpop.eup %1576  ;;  %1598 = vrcp.f32 %v741_v9  ;;  %v2161_v10 = vpop.f32.mrf.mxu0  ;;  %v2198_v0 = vadd.f32 %v2132_v39, %v2137_v3  ;;  %v2202_v7 = vadd.f32 %v2134_v40, %v2137_v3 }
 0x125   : > { %v2163_v45 = vpop.f32.mrf.mxu1  ;;  %v1579_v52 = vpop.eup %1578  ;;  %v726_v11 = vadd.f32 1.0, %v1577_v21  ;;  %1600 = vpow2.f32 %v1437_v8  ;;  %v1438_v54 = vmul.f32 -1.442695, %v503_v15 }
 0x126   : > { %v742_v55 = vadd.f32 1.0, %v1579_v52  ;;  %1602 = vpow2.f32 %v1453_v12  ;;  %v1454_v27 = vmul.f32 -1.442695, %v583_v16  ;;  %v508_v56 = vpop.f32.mrf.mxu0 }
 0x127   : > { %v588_v57 = vpop.f32.mrf.mxu1  ;;  %1604 = vrcp.f32 %v726_v11  ;;  %v509_v46 = vadd.f32 %v508_v56, %v2097_v6 }
 0x128   : > { %v589_v61 = vadd.f32 %v588_v57, %v2097_v6  ;;  %v1581_v62 = vpop.eup %1580  ;;  %1606 = vrcp.f32 %v742_v55  ;;  %v2191_v58 = vpop.f32.mrf.mxu0  ;;  %v2207_v55 = vadd.f32 %v500_v63, %v2137_v3 }
 0x129   : > { %v2193_v8 = vpop.f32.mrf.mxu1  ;;  %v1583_v9 = vpop.eup %1582  ;;  %v819_v12 = vmul.f32 0.98, %v1581_v62  ;;  %1608 = vpow2.f32 %v1438_v54  ;;  %v1439_v13 = vmul.f32 -1.442695, %v509_v46 }
 0x12a   : > { %v1455_v5 = vmul.f32 -1.442695, %v589_v61  ;;  %v1585_v15 = vpop.eup %1584  ;;  %v835_v59 = vmul.f32 0.98, %v1583_v9  ;;  %1610 = vpow2.f32 %v1454_v27  ;;  %v512_v16 = vpop.f32.mrf.mxu0 }
 0x12b   : > { %v592_v21 = vpop.f32.mrf.mxu1  ;;  %v1587_v52 = vpop.eup %1586  ;;  %v2204_v11 = vadd.f32 0.01, %v819_v12  ;;  %v727_v54 = vadd.f32 1.0, %v1585_v15  ;;  %1612 = vpow2.f32 %v1439_v13  ;;  %v513_v40 = vadd.f32 %v512_v16, %v2097_v6 }
 0x12c   : > { %v1589_v56 = vpop.eup %1588  ;;  %v2209_v57 = vadd.f32 0.01, %v835_v59  ;;  %v743_v39 = vadd.f32 1.0, %v1587_v52  ;;  %1614 = vpow2.f32 %v1455_v5  ;;  %v2212_v46 = vpop.f32.mrf.mxu0  ;;  %v2222_v9 = vadd.f32 %v592_v21, %v2097_v6 }
 0x12d   : > { %v2214_v27 = vpop.f32.mrf.mxu1  ;;  %v1591_v61 = vpop.eup %1590  ;;  %v915_v62 = vsub.f32 1.0, %v2204_v11  ;;  %v820_v63 = vmul.f32 0.98, %v1589_v56  ;;  %1616 = vrcp.f32 %v727_v54  ;;  %v883_v13 = vmul.f32 %v2204_v11, %v1971_v17 }
 0x12e   : > { %v1593_v12 = vpop.eup %1592  ;;  %v931_v5 = vsub.f32 1.0, %v2209_v57  ;;  %v836_v15 = vmul.f32 0.98, %v1591_v61  ;;  %1618 = vrcp.f32 %v743_v39  ;;  %v2227_v59 = vpop.f32.mrf.mxu0  ;;  %v899_v54 = vmul.f32 %v2209_v57, %v1977_v19 }
 0x12f   : > { %v2229_v16 = vpop.f32.mrf.mxu1  ;;  %v1595_v52 = vpop.eup %1594  ;;  %v947_v50 = vmul.f32 %v915_v62, %v2145_v14  ;;  %v2234_v21 = vadd.f32 0.01, %v820_v63  ;;  %v728_v56 = vadd.f32 1.0, %v1593_v12  ;;  %v2239_v61 = vmul.f32 -1.442695, %v513_v40 }
 0x130   : > { %v1597_v48 = vpop.eup %1596  ;;  %v963_v17 = vmul.f32 %v931_v5, %v2151_v28  ;;  %v2237_v49 = vadd.f32 0.01, %v836_v15  ;;  %v744_v39 = vadd.f32 1.0, %v1595_v52  ;;  %v2244_v63 = vpop.f32.mrf.mxu0 }
 0x131   : > { %2752 = vst [vmem:[#allocation14_spill] sm:$0xff] %v2234_v21  ;;  %v1599_v47 = vpop.eup %1598  ;;  %v979_v44 = vadd.f32 %v947_v50, %v883_v13  ;;  %v884_v14 = vmul.f32 %v2234_v21, %v1974_v18  ;;  %v916_v62 = vsub.f32 1.0, %v2234_v21  ;;  %v821_v19 = vmul.f32 0.98, %v1597_v48  ;;  %v2249_v40 = vpop.f32.mrf.mxu1 }
 0x132   : > { %v1601_v12 = vpop.eup %1600  ;;  %v995_v42 = vadd.f32 %v963_v17, %v899_v54  ;;  %v900_v28 = vmul.f32 %v2237_v49, %v1980_v20  ;;  %v932_v5 = vsub.f32 1.0, %v2237_v49  ;;  %v837_v15 = vmul.f32 0.98, %v1599_v47 }
 0x133   : > { %v1603_v52 = vpop.eup %1602  ;;  %1011 = vst [vmem:[%s2252_s6] sm:$0xff] %v979_v44  ;;  %v948_v18 = vmul.f32 %v916_v62, %v2155_v33  ;;  %v2256_v48 = vadd.f32 0.01, %v821_v19  ;;  %1620 = vrcp.f32 %v728_v56  ;;  %v729_v50 = vadd.f32 1.0, %v1601_v12  ;;  %v2265_v56 = vpop.f32.mrf.mxu0 }
 0x134   : > { %v1605_v13 = vpop.eup %1604  ;;  %1027 = vst [vmem:[%s2252_s6 + $0x80] sm:$0xff] %v995_v42  ;;  %v964_v20 = vmul.f32 %v932_v5, %v2159_v34  ;;  %v2260_v54 = vadd.f32 0.01, %v837_v15  ;;  %1622 = vrcp.f32 %v744_v39  ;;  %v745_v47 = vadd.f32 1.0, %v1603_v52  ;;  %v2270_v5 = vpop.f32.mrf.mxu1 }
 0x135   : > { %v1607_v17 = vpop.eup %1606  ;;  %v980_v21 = vadd.f32 %v948_v18, %v884_v14  ;;  %v885_v44 = vmul.f32 %v2256_v48, %v1987_v23  ;;  %v917_v33 = vsub.f32 1.0, %v2256_v48  ;;  %v822_v62 = vmul.f32 0.98, %v1605_v13 }
 0x136   : > { %2753 = vst [vmem:[#allocation15_spill] sm:$0xff] %v2260_v54  ;;  %v1609_v19 = vpop.eup %1608  ;;  %v996_v42 = vadd.f32 %v964_v20, %v900_v28  ;;  %v901_v34 = vmul.f32 %v2260_v54, %v1995_v25  ;;  %v933_v12 = vsub.f32 1.0, %v2260_v54  ;;  %v838_v39 = vmul.f32 0.98, %v1607_v17 }
 0x137   : > { %v1611_v14 = vpop.eup %1610  ;;  %1012 = vst [vmem:[%s2252_s6 + $0x8] sm:$0xff] %v980_v21  ;;  %v949_v23 = vmul.f32 %v917_v33, %v2167_v53  ;;  %v2274_v15 = vadd.f32 0.01, %v822_v62  ;;  %1624 = vrcp.f32 %v729_v50  ;;  %v730_v52 = vadd.f32 1.0, %v1609_v19  ;;  %v2282_v21 = vpop.f32.mrf.mxu0 }
 0x138   : > { %v1613_v18 = vpop.eup %1612  ;;  %1028 = vst [vmem:[%s2252_s6 + $0x88] sm:$0xff] %v996_v42  ;;  %v965_v28 = vmul.f32 %v933_v12, %v2171_v22  ;;  %v2278_v13 = vadd.f32 0.01, %v838_v39  ;;  %1626 = vrcp.f32 %v745_v47  ;;  %v746_v25 = vadd.f32 1.0, %v1611_v14  ;;  %v2287_v47 = vpop.f32.mrf.mxu1 }
 0x139   : > { %v1615_v20 = vpop.eup %1614  ;;  %v981_v17 = vadd.f32 %v949_v23, %v885_v44  ;;  %v918_v54 = vsub.f32 1.0, %v2274_v15  ;;  %1628 = vrcp.f32 %v730_v52  ;;  %v1456_v53 = vmul.f32 -1.442695, %v2222_v9 }
 0x13a   : > { %v1617_v50 = vpop.eup %1616  ;;  %v997_v33 = vadd.f32 %v965_v28, %v901_v34  ;;  %v886_v22 = vmul.f32 %v2274_v15, %v1992_v24  ;;  %v934_v62 = vsub.f32 1.0, %v2278_v13  ;;  %1630 = vrcp.f32 %v746_v25 }
 0x13b   : > { %v1619_v19 = vpop.eup %1618  ;;  %1013 = vst [vmem:[%s2252_s6 + $0x10] sm:$0xff] %v981_v17  ;;  %v950_v44 = vmul.f32 %v918_v54, %v2175_v60  ;;  %v823_v42 = vmul.f32 0.98, %v1617_v50  ;;  %v731_v12 = vadd.f32 1.0, %v1613_v18  ;;  %v747_v39 = vadd.f32 1.0, %v1615_v20  ;;  %v2302_v54 = vpop.f32.mrf.mxu0 }
 0x13c   : > { %1029 = vst [vmem:[%s2252_s6 + $0x90] sm:$0xff] %v997_v33  ;;  %v902_v9 = vmul.f32 %v2278_v13, %v1998_v26  ;;  %v966_v34 = vmul.f32 %v934_v62, %v2181_v51  ;;  %v839_v24 = vmul.f32 0.98, %v1619_v19  ;;  %1632 = vpow2.f32 %v2239_v61  ;;  %v2308_v51 = vpop.f32.mrf.mxu1 }
 0x13d   : > { %v982_v14 = vadd.f32 %v950_v44, %v886_v22  ;;  %v2296_v23 = vadd.f32 0.01, %v823_v42  ;;  %v2300_v60 = vadd.f32 %v2141_v1, %v2137_v3  ;;  %1634 = vrcp.f32 %v731_v12  ;;  %v2329_v62 = vpop.f32.mrf.mxu0 }
 0x13e   : > { %v998_v52 = vadd.f32 %v966_v34, %v902_v9  ;;  %v2304_v18 = vadd.f32 0.01, %v839_v24  ;;  %1636 = vrcp.f32 %v747_v39  ;;  %v519_v26 = vadd.f32 %v2227_v59, %v2097_v6  ;;  %v2334_v44 = vpop.f32.mrf.mxu1 }
 0x13f   : > { %1014 = vst [vmem:[%s2252_s6 + $0x18] sm:$0xff] %v982_v14  ;;  %v919_v61 = vsub.f32 1.0, %v2296_v23  ;;  %v2314_v28 = vadd.f32 %v2161_v10, %v2137_v3  ;;  %1638 = vpow2.f32 %v1456_v53  ;;  %v599_v1 = vadd.f32 %v2229_v16, %v2097_v6 }
 0x140   : > { %v1621_v25 = vpop.eup %1620  ;;  %1030 = vst [vmem:[%s2252_s6 + $0x98] sm:$0xff] %v998_v52  ;;  %v903_v20 = vmul.f32 %v2304_v18, %v2013_v31  ;;  %v935_v59 = vsub.f32 1.0, %v2304_v18  ;;  %v2324_v17 = vadd.f32 %v2163_v45, %v2137_v3  ;;  %v1441_v50 = vmul.f32 -1.442695, %v519_v26 }
 0x141   : > { %v1623_v33 = vpop.eup %1622  ;;  %v887_v10 = vmul.f32 %v2296_v23, %v2005_v29  ;;  %v951_v53 = vmul.f32 %v919_v61, %v2185_v2  ;;  %v824_v22 = vmul.f32 0.98, %v1621_v25  ;;  %v1457_v16 = vmul.f32 -1.442695, %v599_v1 }
 0x142   : > { %v967_v31 = vmul.f32 %v935_v59, %v2189_v4  ;;  %v840_v19 = vmul.f32 0.98, %v1623_v33  ;;  %1640 = vpow2.f32 %v1441_v50  ;;  %v523_v45 = vadd.f32 %v2265_v56, %v2097_v6 }
 0x143   : > { %v983_v42 = vadd.f32 %v951_v53, %v887_v10  ;;  %v2336_v12 = vadd.f32 0.01, %v824_v22  ;;  %1642 = vpow2.f32 %v1457_v16  ;;  %v603_v29 = vadd.f32 %v2270_v5, %v2097_v6  ;;  %v2352_v5 = vpop.f32.mrf.mxu0 }
 0x144   : > { %v1625_v2 = vpop.eup %1624  ;;  %v999_v39 = vadd.f32 %v967_v31, %v903_v20  ;;  %v2340_v9 = vadd.f32 0.01, %v840_v19  ;;  %v2344_v4 = vadd.f32 %v2191_v58, %v2137_v3  ;;  %v1442_v34 = vmul.f32 -1.442695, %v523_v45  ;;  %v2358_v20 = vpop.f32.mrf.mxu1 }
 0x145   : > { %v1627_v56 = vpop.eup %1626  ;;  %1015 = vst [vmem:[%s2252_s6 + $0x20] sm:$0xff] %v983_v42  ;;  %v920_v24 = vsub.f32 1.0, %v2336_v12  ;;  %v825_v14 = vmul.f32 0.98, %v1625_v2  ;;  %v2350_v52 = vadd.f32 %v2193_v8, %v2137_v3  ;;  %v1458_v26 = vmul.f32 -1.442695, %v603_v29  ;;  %v2373_v42 = vpop.f32.mrf.mxu0 }
 0x146   : > { %v1629_v61 = vpop.eup %1628  ;;  %1031 = vst [vmem:[%s2252_s6 + $0xa0] sm:$0xff] %v999_v39  ;;  %v888_v1 = vmul.f32 %v2336_v12, %v2010_v30  ;;  %v936_v58 = vsub.f32 1.0, %v2340_v9  ;;  %v841_v25 = vmul.f32 0.98, %v1627_v56  ;;  %1644 = vpow2.f32 %v1442_v34  ;;  %v2380_v34 = vpop.f32.mrf.mxu1 }
 0x147   : > { %v1631_v59 = vpop.eup %1630  ;;  %v952_v50 = vmul.f32 %v920_v24, %v2198_v0  ;;  %v2361_v33 = vadd.f32 0.01, %v825_v14  ;;  %v826_v8 = vmul.f32 0.98, %v1629_v61  ;;  %1646 = vpow2.f32 %v1458_v26 }
 0x148   : > { %v904_v10 = vmul.f32 %v2340_v9, %v2016_v32  ;;  %v968_v53 = vmul.f32 %v936_v58, %v2202_v7  ;;  %v2366_v30 = vadd.f32 0.01, %v841_v25  ;;  %v842_v22 = vmul.f32 0.98, %v1631_v59 }
 0x149   : > { %v1633_v16 = vpop.eup %1632  ;;  %v984_v31 = vadd.f32 %v952_v50, %v888_v1  ;;  %v889_v19 = vmul.f32 %v2361_v33, %v2023_v35  ;;  %v921_v0 = vsub.f32 1.0, %v2361_v33  ;;  %v2371_v45 = vadd.f32 0.01, %v826_v8  ;;  %v538_v8 = vpop.f32.mrf.mxu0 }
 0x14a   : > { %v1635_v29 = vpop.eup %1634  ;;  %v1000_v32 = vadd.f32 %v968_v53, %v904_v10  ;;  %v905_v7 = vmul.f32 %v2366_v30, %v2031_v37  ;;  %v937_v2 = vsub.f32 1.0, %v2366_v30  ;;  %v2378_v39 = vadd.f32 0.01, %v842_v22 }
 0x14b   : > { %v1637_v56 = vpop.eup %1636  ;;  %1016 = vst [vmem:[%s2252_s6 + $0x28] sm:$0xff] %v984_v31  ;;  %v953_v35 = vmul.f32 %v921_v0, %v2207_v55  ;;  %v890_v24 = vmul.f32 %v2371_v45, %v2028_v36  ;;  %v922_v14 = vsub.f32 1.0, %v2371_v45  ;;  %v827_v26 = vmul.f32 0.98, %v1635_v29  ;;  %v618_v31 = vpop.f32.mrf.mxu1 }
 0x14c   : > { %v1639_v61 = vpop.eup %1638  ;;  %1032 = vst [vmem:[%s2252_s6 + $0xa8] sm:$0xff] %v1000_v32  ;;  %v969_v37 = vmul.f32 %v937_v2, %v2300_v60  ;;  %v906_v1 = vmul.f32 %v2378_v39, %v2034_v38  ;;  %v938_v58 = vsub.f32 1.0, %v2378_v39  ;;  %v843_v25 = vmul.f32 0.98, %v1637_v56 }
 0x14d   : > { %v985_v59 = vadd.f32 %v953_v35, %v889_v19  ;;  %v954_v55 = vmul.f32 %v922_v14, %v2314_v28  ;;  %v2393_v50 = vadd.f32 0.01, %v827_v26  ;;  %v732_v36 = vadd.f32 1.0, %v1633_v16  ;;  %v2410_v35 = vpop.f32.mrf.mxu0  ;;  %v2416_v14 = vpop.f32.mrf.mxu1 }
 0x14e   : > { %v1001_v10 = vadd.f32 %v969_v37, %v905_v7  ;;  %v970_v53 = vmul.f32 %v938_v58, %v2324_v17  ;;  %v2396_v22 = vadd.f32 0.01, %v843_v25  ;;  %v748_v60 = vadd.f32 1.0, %v1639_v61 }
 0x14f   : > { %v1641_v38 = vpop.eup %1640  ;;  %1017 = vst [vmem:[%s2252_s6 + $0x30] sm:$0xff] %v985_v59  ;;  %v986_v0 = vadd.f32 %v954_v55, %v890_v24  ;;  %v891_v28 = vmul.f32 %v2393_v50, %v2041_v41  ;;  %v923_v19 = vsub.f32 1.0, %v2393_v50  ;;  %1648 = vrcp.f32 %v732_v36  ;;  %v542_v55 = vpop.f32.mrf.mxu0 }
 0x150   : > { %v1643_v16 = vpop.eup %1642  ;;  %1033 = vst [vmem:[%s2252_s6 + $0xb0] sm:$0xff] %v1001_v10  ;;  %v1002_v29 = vadd.f32 %v970_v53, %v906_v1  ;;  %v907_v17 = vmul.f32 %v2396_v22, %v2049_v43  ;;  %v939_v32 = vsub.f32 1.0, %v2396_v22  ;;  %1650 = vrcp.f32 %v748_v60  ;;  %v622_v10 = vpop.f32.mrf.mxu1 }
 0x151   : > { %1018 = vst [vmem:[%s2252_s6 + $0x38] sm:$0xff] %v986_v0  ;;  %v955_v7 = vmul.f32 %v923_v19, %v2344_v4  ;;  %v733_v2 = vadd.f32 1.0, %v1641_v38  ;;  %v749_v56 = vadd.f32 1.0, %v1643_v16  ;;  %v529_v41 = vadd.f32 %v2302_v54, %v2097_v6 }
 0x152   : > { %1034 = vst [vmem:[%s2252_s6 + $0xb8] sm:$0xff] %v1002_v29  ;;  %v971_v24 = vmul.f32 %v939_v32, %v2350_v52  ;;  %v609_v43 = vadd.f32 %v2308_v51, %v2097_v6  ;;  %v533_v37 = vadd.f32 %v2352_v5, %v2097_v6  ;;  %v613_v51 = vadd.f32 %v2358_v20, %v2097_v6 }
 0x153   : > { %v1645_v26 = vpop.eup %1644  ;;  %v987_v61 = vadd.f32 %v955_v7, %v891_v28  ;;  %1652 = vrcp.f32 %v733_v2  ;;  %v1443_v4 = vmul.f32 -1.442695, %v529_v41  ;;  %v539_v36 = vadd.f32 %v538_v8, %v2097_v6  ;;  %v2754_v41 = vld [vmem:[#allocation8_spill] sm:$0xff] }
 0x154   : > { %v1647_v54 = vpop.eup %1646  ;;  %v1003_v1 = vadd.f32 %v971_v24, %v907_v17  ;;  %1654 = vrcp.f32 %v749_v56  ;;  %v734_v58 = vadd.f32 1.0, %v1645_v26  ;;  %v1459_v25 = vmul.f32 -1.442695, %v609_v43 }
 0x155   : > { %1019 = vst [vmem:[%s2252_s6 + $0x40] sm:$0xff] %v987_v61  ;;  %v750_v52 = vadd.f32 1.0, %v1647_v54  ;;  %1656 = vpow2.f32 %v1443_v4  ;;  %v1444_v59 = vmul.f32 -1.442695, %v533_v37  ;;  %v1460_v5 = vmul.f32 -1.442695, %v613_v51 }
 0x156   : > { %1035 = vst [vmem:[%s2252_s6 + $0xc0] sm:$0xff] %v1003_v1  ;;  %1658 = vrcp.f32 %v734_v58  ;;  %v619_v53 = vadd.f32 %v618_v31, %v2097_v6  ;;  %v1445_v60 = vmul.f32 -1.442695, %v539_v36  ;;  %v543_v38 = vadd.f32 %v542_v55, %v2097_v6  ;;  %v2756_v1 = vld [vmem:[#allocation14_spill] sm:$0xff] }
 0x157   : > { %1660 = vrcp.f32 %v750_v52  ;;  %v623_v28 = vadd.f32 %v622_v10, %v2097_v6  ;;  %v515_v31 = vadd.f32 %v2212_v46, %v2137_v3  ;;  %v595_v32 = vadd.f32 %v2214_v27, %v2137_v3  ;;  %v2757_v36 = vld [vmem:[#allocation10_spill] sm:$0xff] }
 0x158   : > { %1662 = vpow2.f32 %v1459_v25  ;;  %v1461_v0 = vmul.f32 -1.442695, %v619_v53  ;;  %v1446_v19 = vmul.f32 -1.442695, %v543_v38  ;;  %v601_v7 = vadd.f32 %v2249_v40, %v2137_v3  ;;  %v2758_v38 = vld [vmem:[#allocation12_spill] sm:$0xff] }
 0x159   : > { %1664 = vpow2.f32 %v1444_v59  ;;  %v1462_v29 = vmul.f32 -1.442695, %v623_v28  ;;  %v525_v46 = vadd.f32 %v2282_v21, %v2137_v3  ;;  %v605_v27 = vadd.f32 %v2287_v47, %v2137_v3 }
 0x15a   : > { %1666 = vpow2.f32 %v1460_v5 }
 0x15b   : > { %1668 = vlog2.f32 %v2204_v11  ;;  %v521_v11 = vadd.f32 %v2244_v63, %v2137_v3 }
 0x15c   : > { %v1649_v20 = vpop.eup %1648  ;;  %1670 = vpow2.f32 %v1445_v60 }
 0x15d   : > { %v1651_v8 = vpop.eup %1650  ;;  %v828_v16 = vmul.f32 0.98, %v1649_v20  ;;  %1672 = vpow2.f32 %v1461_v0 }
 0x15e   : > { %v844_v17 = vmul.f32 0.98, %v1651_v8  ;;  %1674 = vlog2.f32 %v2237_v49 }
 0x15f   : > { %v2434_v6 = vadd.f32 0.01, %v828_v16  ;;  %1676 = vlog2.f32 %v2209_v57  ;;  %v2755_v57 = vld [vmem:[#allocation9_spill] sm:$0xff] }
 0x160   : > { %v1653_v2 = vpop.eup %1652  ;;  %v2441_v56 = vadd.f32 0.01, %v844_v17  ;;  %1678 = vpow2.f32 %v1446_v19 }
 0x161   : > { %v1655_v49 = vpop.eup %1654  ;;  %v892_v24 = vmul.f32 %v2434_v6, %v2754_v41  ;;  %v924_v63 = vsub.f32 1.0, %v2434_v6  ;;  %v829_v43 = vmul.f32 0.98, %v1653_v2  ;;  %1680 = vpow2.f32 %v1462_v29 }
 0x162   : > { %v1657_v40 = vpop.eup %1656  ;;  %v908_v26 = vmul.f32 %v2441_v56, %v2755_v57  ;;  %v940_v61 = vsub.f32 1.0, %v2441_v56  ;;  %v845_v4 = vmul.f32 0.98, %v1655_v49  ;;  %1682 = vlog2.f32 %v2256_v48 }
 0x163   : > { %v1659_v21 = vpop.eup %1658  ;;  %v956_v47 = vmul.f32 %v924_v63, %v515_v31  ;;  %v2454_v37 = vadd.f32 0.01, %v829_v43  ;;  %v735_v54 = vadd.f32 1.0, %v1657_v40  ;;  %1684 = vlog2.f32 %v2756_v1  ;;  %v2759_v31 = vld [vmem:[#allocation11_spill] sm:$0xff]  ;;  %v2760_v63 = vld [vmem:[#allocation13_spill] sm:$0xff] }
 0x164   : > { %v1661_v58 = vpop.eup %1660  ;;  %v972_v25 = vmul.f32 %v940_v61, %v595_v32  ;;  %v2457_v52 = vadd.f32 0.01, %v845_v4  ;;  %v830_v59 = vmul.f32 0.98, %v1659_v21  ;;  %1686 = vlog2.f32 %v2274_v15 }
 0x165   : > { %v1663_v51 = vpop.eup %1662  ;;  %v988_v55 = vadd.f32 %v956_v47, %v892_v24  ;;  %v893_v48 = vmul.f32 %v2454_v37, %v2757_v36  ;;  %v925_v10 = vsub.f32 1.0, %v2454_v37  ;;  %v846_v5 = vmul.f32 0.98, %v1661_v58 }
 0x166   : > { %v1665_v53 = vpop.eup %1664  ;;  %v1004_v60 = vadd.f32 %v972_v25, %v908_v26  ;;  %v909_v0 = vmul.f32 %v2457_v52, %v2758_v38  ;;  %v941_v28 = vsub.f32 1.0, %v2457_v52  ;;  %v2466_v20 = vadd.f32 0.01, %v830_v59 }
 0x167   : > { %v1667_v19 = vpop.eup %1666  ;;  %1020 = vst [vmem:[%s2252_s6 + $0x48] sm:$0xff] %v988_v55  ;;  %v957_v15 = vmul.f32 %v925_v10, %v521_v11  ;;  %v2469_v8 = vadd.f32 0.01, %v846_v5  ;;  %1688 = vrcp.f32 %v735_v54  ;;  %v751_v16 = vadd.f32 1.0, %v1663_v51  ;;  %v2761_v10 = vld [vmem:[#allocation15_spill] sm:$0xff] }
 0x168   : > { %v1669_v29 = vpop.eup %1668  ;;  %1036 = vst [vmem:[%s2252_s6 + $0xc8] sm:$0xff] %v1004_v60  ;;  %v973_v17 = vmul.f32 %v941_v28, %v601_v7  ;;  %v894_v32 = vmul.f32 %v2466_v20, %v2759_v31  ;;  %v926_v2 = vsub.f32 1.0, %v2466_v20  ;;  %v736_v49 = vadd.f32 1.0, %v1665_v53 }
 0x169   : > { %v1671_v41 = vpop.eup %1670  ;;  %v989_v24 = vadd.f32 %v957_v15, %v893_v48  ;;  %v910_v11 = vmul.f32 %v2469_v8, %v2760_v63  ;;  %v942_v43 = vsub.f32 1.0, %v2469_v8  ;;  %1690 = vrcp.f32 %v751_v16 }
 0x16a   : > { %v1673_v40 = vpop.eup %1672  ;;  %v1005_v57 = vadd.f32 %v973_v17, %v909_v0  ;;  %v958_v26 = vmul.f32 %v926_v2, %v525_v46  ;;  %1692 = vrcp.f32 %v736_v49  ;;  %v752_v7 = vadd.f32 1.0, %v1667_v19  ;;  %v1756_v2 = vld [vmem:[%s1968_s17 + $0x60] sm:$0xff] }
 0x16b   : > { %v1675_v61 = vpop.eup %1674  ;;  %1021 = vst [vmem:[%s2252_s6 + $0x50] sm:$0xff] %v989_v24  ;;  %v974_v4 = vmul.f32 %v942_v43, %v605_v27  ;;  %v1044_v21 = vmul.f32 0.6931472, %v1669_v29  ;;  %v737_v47 = vadd.f32 1.0, %v1671_v41  ;;  %v753_v54 = vadd.f32 1.0, %v1673_v40  ;;  %v1757_v24 = vld [vmem:[%s1968_s17 + $0xe0] sm:$0xff] }
 0x16c   : > { %v1677_v1 = vpop.eup %1676  ;;  %1037 = vst [vmem:[%s2252_s6 + $0xd0] sm:$0xff] %v1005_v57  ;;  %v990_v58 = vadd.f32 %v958_v26, %v894_v32  ;;  %1694 = vrcp.f32 %v752_v7  ;;  %v1078_v25 = vmul.f32 0.6931472, %v1675_v61  ;;  %v531_v16 = vadd.f32 %v2329_v62, %v2137_v3 }
 0x16d   : > { %v1679_v59 = vpop.eup %1678  ;;  %v1006_v51 = vadd.f32 %v974_v4, %v910_v11  ;;  %1107 = vadd.xlane.f32.xlu0 %v1044_v21  ;;  %1696 = vrcp.f32 %v737_v47  ;;  %v1076_v27 = vmul.f32 0.6931472, %v1677_v1  ;;  %v611_v29 = vadd.f32 %v2334_v44, %v2137_v3 }
 0x16e   : > { %v1681_v46 = vpop.eup %1680  ;;  %1022 = vst [vmem:[%s2252_s6 + $0x58] sm:$0xff] %v990_v58  ;;  %1698 = vrcp.f32 %v753_v54  ;;  %1141 = vadd.xlane.f32.xlu1 %v1078_v25  ;;  %v738_v55 = vadd.f32 1.0, %v1679_v59  ;;  %v615_v62 = vadd.f32 %v2380_v34, %v2137_v3  ;;  %v541_v44 = vadd.f32 %v2410_v35, %v2137_v3  ;;  %v1759_v58 = vld [vmem:[%s1968_s17 + $0xe8] sm:$0xff] }
 0x16f   : > { %v1683_v36 = vpop.eup %1682  ;;  %1038 = vst [vmem:[%s2252_s6 + $0xd8] sm:$0xff] %v1006_v51  ;;  %v754_v48 = vadd.f32 1.0, %v1681_v46  ;;  %1700 = vlog2.f32 %v2761_v10 }
 0x170   : > { %v1685_v5 = vpop.eup %1684  ;;  %1702 = vrcp.f32 %v738_v55  ;;  %v1048_v53 = vmul.f32 0.6931472, %v1683_v36  ;;  %v1760_v36 = vld [vmem:[%s1968_s17 + $0x70] sm:$0xff] }
 0x171   : > { %v1687_v60 = vpop.eup %1686  ;;  %1139 = vadd.xlane.f32.xlu0 %v1076_v27  ;;  %1704 = vrcp.f32 %v754_v48  ;;  %v1046_v0 = vmul.f32 0.6931472, %v1685_v5  ;;  %v544_v5 = vpop.f32.mrf.mxu0 }
 0x172   : > { %1111 = vadd.xlane.f32.xlu1 %v1048_v53  ;;  %v1050_v38 = vmul.f32 0.6931472, %v1687_v60  ;;  %1706 = vlog2.f32 %v2278_v13 }
 0x173   : > { %1708 = vlog2.f32 %v2296_v23 }
 0x174   : > { %v1689_v28 = vpop.eup %1688  ;;  %1710 = vlog2.f32 %v2336_v12  ;;  %v535_v12 = vadd.f32 %v2373_v42, %v2137_v3  ;;  %v621_v42 = vadd.f32 %v2416_v14, %v2137_v3 }
 0x175   : > { %v831_v19 = vmul.f32 0.98, %v1689_v28  ;;  %1109 = vadd.xlane.f32.xlu0 %v1046_v0  ;;  %1712 = vlog2.f32 %v2304_v18  ;;  %v1761_v0 = vld [vmem:[%s1968_s17 + $0xf0] sm:$0xff] }
 0x176   : > { %v1691_v15 = vpop.eup %1690  ;;  %1113 = vadd.xlane.f32.xlu1 %v1050_v38  ;;  %1714 = vlog2.f32 %v2340_v9 }
 0x177   : > { %v1693_v13 = vpop.eup %1692  ;;  %v847_v23 = vmul.f32 0.98, %v1691_v15  ;;  %v2492_v17 = vadd.f32 0.01, %v831_v19  ;;  %1716 = vlog2.f32 %v2361_v33 }
 0x178   : > { %v832_v18 = vmul.f32 0.98, %v1693_v13  ;;  %1718 = vlog2.f32 %v2371_v45 }
 0x179   : > { %v1695_v9 = vpop.eup %1694  ;;  %v927_v31 = vsub.f32 1.0, %v2492_v17  ;;  %v2503_v32 = vadd.f32 0.01, %v847_v23  ;;  %1720 = vlog2.f32 %v2366_v30  ;;  %v895_v34 = vmul.f32 %v1756_v2, %v2492_v17  ;;  %v1758_v30 = vld [vmem:[%s1968_s17 + $0x68] sm:$0xff] }
 0x17a   : > { %v1697_v33 = vpop.eup %1696  ;;  %v848_v49 = vmul.f32 0.98, %v1695_v9  ;;  %v2510_v41 = vadd.f32 0.01, %v832_v18  ;;  %1722 = vlog2.f32 %v2378_v39 }
 0x17b   : > { %v1699_v45 = vpop.eup %1698  ;;  %v959_v35 = vmul.f32 %v927_v31, %v531_v16  ;;  %v911_v63 = vmul.f32 %v1757_v24, %v2503_v32  ;;  %v943_v11 = vsub.f32 1.0, %v2503_v32  ;;  %v833_v14 = vmul.f32 0.98, %v1697_v33 }
 0x17c   : > { %v1701_v43 = vpop.eup %1700  ;;  %v896_v40 = vmul.f32 %v1758_v30, %v2510_v41  ;;  %v928_v57 = vsub.f32 1.0, %v2510_v41  ;;  %v2519_v26 = vadd.f32 0.01, %v848_v49  ;;  %v849_v39 = vmul.f32 0.98, %v1699_v45 }
 0x17d   : > { %v1703_v7 = vpop.eup %1702  ;;  %v991_v61 = vadd.f32 %v959_v35, %v895_v34  ;;  %v975_v4 = vmul.f32 %v943_v11, %v611_v29  ;;  %v2521_v21 = vadd.f32 0.01, %v833_v14  ;;  %v1080_v47 = vmul.f32 0.6931472, %v1701_v43  ;;  %v1762_v11 = vld [vmem:[%s1968_s17 + $0x78] sm:$0xff] }
 0x17e   : > { %v1705_v54 = vpop.eup %1704  ;;  %v960_v1 = vmul.f32 %v928_v57, %v535_v12  ;;  %v912_v25 = vmul.f32 %v1759_v58, %v2519_v26  ;;  %v944_v59 = vsub.f32 1.0, %v2519_v26  ;;  %v2526_v51 = vadd.f32 0.01, %v849_v39 }
 0x17f   : > { %v1707_v46 = vpop.eup %1706  ;;  %1023 = vst [vmem:[%s2252_s6 + $0x60] sm:$0xff] %v991_v61  ;;  %v1007_v55 = vadd.f32 %v975_v4, %v911_v63  ;;  %v897_v27 = vmul.f32 %v1760_v36, %v2521_v21  ;;  %v929_v48 = vsub.f32 1.0, %v2521_v21  ;;  %v834_v10 = vmul.f32 0.98, %v1703_v7  ;;  %1143 = vadd.xlane.f32.xlu0 %v1080_v47  ;;  %v1763_v61 = vld [vmem:[%s1968_s17 + $0xf8] sm:$0xff] }
 0x180   : > { %v1709_v53 = vpop.eup %1708  ;;  %v992_v60 = vadd.f32 %v960_v1, %v896_v40  ;;  %v976_v38 = vmul.f32 %v944_v59, %v615_v62  ;;  %v913_v28 = vmul.f32 %v1761_v0, %v2526_v51  ;;  %v945_v19 = vsub.f32 1.0, %v2526_v51  ;;  %v624_v62 = vpop.f32.mrf.mxu1 }
 0x181   : > { %v1711_v15 = vpop.eup %1710  ;;  %1039 = vst [vmem:[%s2252_s6 + $0xe0] sm:$0xff] %v1007_v55  ;;  %v961_v16 = vmul.f32 %v929_v48, %v541_v44  ;;  %v850_v29 = vmul.f32 0.98, %v1705_v54  ;;  %v2536_v13 = vadd.f32 0.01, %v834_v10  ;;  %v545_v31 = vadd.f32 %v544_v5, %v2137_v3 }
 0x182   : > { %v1082_v23 = vmul.f32 0.6931472, %v1707_v46  ;;  %v1713_v12 = vpop.eup %1712  ;;  %1024 = vst [vmem:[%s2252_s6 + $0x68] sm:$0xff] %v992_v60  ;;  %v1008_v18 = vadd.f32 %v976_v38, %v912_v25  ;;  %v977_v9 = vmul.f32 %v945_v19, %v621_v42  ;;  %v1052_v33 = vmul.f32 0.6931472, %v1709_v53 }
 0x183   : > { %v1715_v2 = vpop.eup %1714  ;;  %v993_v34 = vadd.f32 %v961_v16, %v897_v27  ;;  %v930_v49 = vsub.f32 1.0, %v2536_v13  ;;  %v2541_v44 = vadd.f32 0.01, %v850_v29  ;;  %v1054_v45 = vmul.f32 0.6931472, %v1711_v15 }
 0x184   : > { %1145 = vadd.xlane.f32.xlu1 %v1082_v23  ;;  %v1717_v35 = vpop.eup %1716  ;;  %1040 = vst [vmem:[%s2252_s6 + $0xe8] sm:$0xff] %v1008_v18  ;;  %v1009_v24 = vadd.f32 %v977_v9, %v913_v28  ;;  %1115 = vadd.xlane.f32.xlu0 %v1052_v33  ;;  %v1084_v42 = vmul.f32 0.6931472, %v1713_v12  ;;  %1724 = vlog2.f32 %v2393_v50  ;;  %v898_v14 = vmul.f32 %v1762_v11, %v2536_v13 }
 0x185   : > { %v1719_v63 = vpop.eup %1718  ;;  %1025 = vst [vmem:[%s2252_s6 + $0x70] sm:$0xff] %v993_v34  ;;  %v962_v43 = vmul.f32 %v930_v49, %v545_v31  ;;  %v625_v30 = vadd.f32 %v624_v62, %v2137_v3  ;;  %v946_v40 = vsub.f32 1.0, %v2541_v44  ;;  %1726 = vlog2.f32 %v2434_v6 }
 0x186   : > { %v1721_v57 = vpop.eup %1720  ;;  %1041 = vst [vmem:[%s2252_s6 + $0xf0] sm:$0xff] %v1009_v24  ;;  %v914_v50 = vmul.f32 %v1763_v61, %v2541_v44  ;;  %1728 = vlog2.f32 %v2396_v22  ;;  %v1056_v47 = vmul.f32 0.6931472, %v1717_v35  ;;  %v1086_v54 = vmul.f32 0.6931472, %v1715_v2 }
 0x187   : > { %v1723_v39 = vpop.eup %1722  ;;  %v994_v7 = vadd.f32 %v962_v43, %v898_v14  ;;  %v978_v4 = vmul.f32 %v946_v40, %v625_v30  ;;  %1730 = vlog2.f32 %v2441_v56  ;;  %v1058_v6 = vmul.f32 0.6931472, %v1719_v63 }
 0x188   : > { %1117 = vadd.xlane.f32.xlu1 %v1054_v45  ;;  %1147 = vadd.xlane.f32.xlu0 %v1084_v42  ;;  %1732 = vlog2.f32 %v2454_v37  ;;  %v1088_v1 = vmul.f32 0.6931472, %v1721_v57  ;;  %v1090_v56 = vmul.f32 0.6931472, %v1723_v39 }
 0x189   : > { %1026 = vst [vmem:[%s2252_s6 + $0x78] sm:$0xff] %v994_v7  ;;  %v1010_v3 = vadd.f32 %v978_v4, %v914_v50  ;;  %1734 = vlog2.f32 %v2466_v20 }
 0x18a   : > { %1736 = vlog2.f32 %v2457_v52 }
 0x18b   : > { %1042 = vst [vmem:[%s2252_s6 + $0xf8] sm:$0xff] %v1010_v3  ;;  %1738 = vlog2.f32 %v2492_v17 }
 0x18c   : > { %1149 = vadd.xlane.f32.xlu1 %v1086_v54  ;;  %1119 = vadd.xlane.f32.xlu0 %v1056_v47  ;;  %1740 = vlog2.f32 %v2469_v8 }
 0x18d   : > { %1742 = vlog2.f32 %v2510_v41 }
 0x18e   : > { %1744 = vlog2.f32 %v2503_v32 }
 0x18f   : > { %1746 = vlog2.f32 %v2521_v21 }
 0x190   : > { %1121 = vadd.xlane.f32.xlu1 %v1058_v6  ;;  %1151 = vadd.xlane.f32.xlu0 %v1088_v1  ;;  %1748 = vlog2.f32 %v2519_v26 }
 0x191   : > { %v1725_v22 = vpop.eup %1724  ;;  %1750 = vlog2.f32 %v2536_v13 }
 0x192   : > { %v1060_v58 = vmul.f32 0.6931472, %v1725_v22  ;;  %v1727_v25 = vpop.eup %1726  ;;  %1752 = vlog2.f32 %v2526_v51 }
 0x193   : > { %v1729_v37 = vpop.eup %1728  ;;  %v1062_v20 = vmul.f32 0.6931472, %v1727_v25  ;;  %1754 = vlog2.f32 %v2541_v44 }
 0x194   : > { %1153 = vadd.xlane.f32.xlu1 %v1090_v56  ;;  %1123 = vadd.xlane.f32.xlu0 %v1060_v58  ;;  %v1731_v59 = vpop.eup %1730  ;;  %v1092_v52 = vmul.f32 0.6931472, %v1729_v37 }
 0x195   : > { %v1733_v46 = vpop.eup %1732  ;;  %v1094_v36 = vmul.f32 0.6931472, %v1731_v59 }
 0x196   : > { %v1735_v55 = vpop.eup %1734  ;;  %v1064_v17 = vmul.f32 0.6931472, %v1733_v46 }
 0x197   : > { %v1737_v8 = vpop.eup %1736  ;;  %v1066_v41 = vmul.f32 0.6931472, %v1735_v55 }
 0x198   : > { %1125 = vadd.xlane.f32.xlu1 %v1062_v20  ;;  %1155 = vadd.xlane.f32.xlu0 %v1092_v52  ;;  %v1096_v27 = vmul.f32 0.6931472, %v1737_v8  ;;  %v1739_v32 = vpop.eup %1738 }
 0x199   : > { %v1741_v48 = vpop.eup %1740  ;;  %v1068_v5 = vmul.f32 0.6931472, %v1739_v32 }
 0x19a   : > { %v1743_v10 = vpop.eup %1742  ;;  %v1098_v21 = vmul.f32 0.6931472, %v1741_v48 }
 0x19b   : > { %v1745_v53 = vpop.eup %1744  ;;  %v1070_v26 = vmul.f32 0.6931472, %v1743_v10 }
 0x19c   : > { %1157 = vadd.xlane.f32.xlu1 %v1094_v36  ;;  %1127 = vadd.xlane.f32.xlu0 %v1064_v17  ;;  %v1100_v60 = vmul.f32 0.6931472, %v1745_v53  ;;  %v1747_v38 = vpop.eup %1746 }
 0x19d   : > { %v1749_v0 = vpop.eup %1748  ;;  %v1072_v51 = vmul.f32 0.6931472, %v1747_v38 }
 0x19e   : > { %v1751_v28 = vpop.eup %1750  ;;  %v1102_v15 = vmul.f32 0.6931472, %v1749_v0 }
 0x19f   : > { %v1753_v19 = vpop.eup %1752  ;;  %v1074_v16 = vmul.f32 0.6931472, %v1751_v28 }
 0x1a0   : > { %1129 = vadd.xlane.f32.xlu1 %v1066_v41  ;;  %1159 = vadd.xlane.f32.xlu0 %v1096_v27  ;;  %v1104_v29 = vmul.f32 0.6931472, %v1753_v19  ;;  %v1755_v13 = vpop.eup %1754 }
 0x1a1   : > { %v1106_v23 = vmul.f32 0.6931472, %v1755_v13 }
 0x1a4   : > { %1161 = vadd.xlane.f32.xlu1 %v1098_v21  ;;  %1131 = vadd.xlane.f32.xlu0 %v1068_v5 }
 0x1a8   : > { %1133 = vadd.xlane.f32.xlu1 %v1070_v26  ;;  %1163 = vadd.xlane.f32.xlu0 %v1100_v60 }
 0x1ac   : > { %1165 = vadd.xlane.f32.xlu1 %v1102_v15  ;;  %1135 = vadd.xlane.f32.xlu0 %v1072_v51 }
 0x1b0   : > { %1137 = vadd.xlane.f32.xlu1 %v1074_v16  ;;  %1167 = vadd.xlane.f32.xlu0 %v1104_v29 }
 0x1b4   : > { %1169 = vadd.xlane.f32.xlu1 %v1106_v23 }
 0x1b5   : > { %1803 = shalt.err (!%p1800_p0)
}
 0x1b6   : > { %s1804_s17 = scalar_lea.hbm %s2574_s10, 4096  ;;  %s1808_s26 = scalar_lea.hbm %s2733_s4, 8192 }
 0x1b7   : > { %p1805_p1 = scmp.ne.s32.totalorder %s2574_s10, %s1804_s17  ;;  %p1809_p4 = scmp.lt.s32.totalorder %s2574_s10, %s2733_s4 }
 0x1b8   : > { %p1810_p7 = scmp.lt.s32.totalorder %s1808_s26, %s1804_s17 }
 0x1b9   : > { %p1806_p2 = pnand %p1805_p1, %p1931_p5 }
 0x1ba   : > { %p1811_p6 = por %p1810_p7, %p1809_p4 }
 0x1bb   : > { %p1807_p3 = pneg %p1806_p2 }
 0x1bd   : > { %p1812_p8 = pnand %p1811_p6, %p1807_p3 }
 0x1bf   : > { %1815 = shalt.err (!%p1812_p8)
}
 0x1c0   : > { %s1861_s7 = smov 128   ;;  %s1862_s8 = smov 8   ;;  %vm1235_vm0 = vcmask 7168  }
 0x1c1   : > { %1489 = dma.vmem_to_hbm [thread:$0]  (%p1931_p5), %s2577_s11, 4096, %s2574_s10, %s2581_s12, %s1861_s7, %s1861_s7, %s1862_s8  }
 0x1c2   : > { %s2608_s22 = scalar_lea.vmem %s2732_s3, %s1962_s14  ;;  %s2616_s17 = scalar_lea.vmem %s2734_s5, %s1962_s14 }
 0x1c3   : > { %v1171_v12 = vld [vmem:[%s2608_s22] sm:$0xff]  ;;  %v1188_v18 = vld [vmem:[%s2608_s22 + $0x88] sm:$0xff]  ;;  %v1173_v34 = vld [vmem:[%s2608_s22 + $0x10] sm:$0xff] }
 0x1c4   : > { %v1187_v2 = vld [vmem:[%s2608_s22 + $0x80] sm:$0xff]  ;;  %v1172_v24 = vld [vmem:[%s2608_s22 + $0x8] sm:$0xff]  ;;  %v1174_v42 = vld [vmem:[%s2608_s22 + $0x18] sm:$0xff] }
 0x1c5   : > { %v1189_v30 = vld [vmem:[%s2608_s22 + $0x90] sm:$0xff]  ;;  %v1190_v39 = vld [vmem:[%s2608_s22 + $0x98] sm:$0xff]  ;;  %v1175_v7 = vld [vmem:[%s2608_s22 + $0x20] sm:$0xff] }
 0x1c6   : > { %v1176_v3 = vld [vmem:[%s2608_s22 + $0x28] sm:$0xff]  ;;  %v1191_v54 = vld [vmem:[%s2608_s22 + $0xa0] sm:$0xff]  ;;  %v1177_v25 = vld [vmem:[%s2608_s22 + $0x30] sm:$0xff] }
 0x1c7   : > { %v1192_v58 = vld [vmem:[%s2608_s22 + $0xa8] sm:$0xff]  ;;  %v1178_v46 = vld [vmem:[%s2608_s22 + $0x38] sm:$0xff]  ;;  %v1193_v55 = vld [vmem:[%s2608_s22 + $0xb0] sm:$0xff] }
 0x1c8   : > { %v1194_v27 = vld [vmem:[%s2608_s22 + $0xb8] sm:$0xff]  ;;  %v1179_v32 = vld [vmem:[%s2608_s22 + $0x40] sm:$0xff]  ;;  %v1180_v21 = vld [vmem:[%s2608_s22 + $0x48] sm:$0xff] }
 0x1c9   : > { %v1195_v26 = vld [vmem:[%s2608_s22 + $0xc0] sm:$0xff]  ;;  %v1196_v51 = vld [vmem:[%s2608_s22 + $0xc8] sm:$0xff]  ;;  %v1181_v19 = vld [vmem:[%s2608_s22 + $0x50] sm:$0xff] }
 0x1ca   : > { %v1182_v23 = vld [vmem:[%s2608_s22 + $0x58] sm:$0xff] }
 0x1f6   : > { %v1108_v9 = vpop.xlane.xlu0 %1107 }
 0x1f7   : > { %v1203_v31 = vsub.f32 %v1171_v12, %v1108_v9  ;;  %v1142_v62 = vpop.xlane.xlu1 %1141  ;;  %v1197_v12 = vld [vmem:[%s2608_s22 + $0xd0] sm:$0xff] }
 0x1f8   : > { %v1220_v33 = vsub.f32 %v1188_v18, %v1142_v62 }
 0x1f9   : > { %1236 = vst.msk [vmem:[%s2616_s17] sm:$0xff] %vm1235_vm0, %v1203_v31 }
 0x1fa   : > { %1253 = vst.msk [vmem:[%s2616_s17 + $0x88] sm:$0xff] %vm1235_vm0, %v1220_v33  ;;  %v1140_v49 = vpop.xlane.xlu0 %1139  ;;  %v1198_v33 = vld [vmem:[%s2608_s22 + $0xd8] sm:$0xff] }
 0x1fb   : > { %v1219_v44 = vsub.f32 %v1187_v2, %v1140_v49  ;;  %v1112_v45 = vpop.xlane.xlu1 %1111  ;;  %v1183_v2 = vld [vmem:[%s2608_s22 + $0x60] sm:$0xff] }
 0x1fc   : > { %v1205_v35 = vsub.f32 %v1173_v34, %v1112_v45 }
 0x1fd   : > { %1252 = vst.msk [vmem:[%s2616_s17 + $0x80] sm:$0xff] %vm1235_vm0, %v1219_v44 }
 0x1fe   : > { %1238 = vst.msk [vmem:[%s2616_s17 + $0x10] sm:$0xff] %vm1235_vm0, %v1205_v35  ;;  %v1110_v63 = vpop.xlane.xlu0 %1109  ;;  %v1184_v35 = vld [vmem:[%s2608_s22 + $0x68] sm:$0xff] }
 0x1ff   : > { %v1204_v11 = vsub.f32 %v1172_v24, %v1110_v63  ;;  %v1114_v14 = vpop.xlane.xlu1 %1113  ;;  %v1199_v24 = vld [vmem:[%s2608_s22 + $0xe0] sm:$0xff] }
 0x200   : > { %v1206_v43 = vsub.f32 %v1174_v42, %v1114_v14 }
 0x201   : > { %1237 = vst.msk [vmem:[%s2616_s17 + $0x8] sm:$0xff] %vm1235_vm0, %v1204_v11 }
 0x202   : > { %1239 = vst.msk [vmem:[%s2616_s17 + $0x18] sm:$0xff] %vm1235_vm0, %v1206_v43  ;;  %v1200_v43 = vld [vmem:[%s2608_s22 + $0xe8] sm:$0xff] }
 0x208   : > { %v1144_v40 = vpop.xlane.xlu0 %1143 }
 0x209   : > { %v1221_v57 = vsub.f32 %v1189_v30, %v1144_v40  ;;  %v1185_v30 = vld [vmem:[%s2608_s22 + $0x70] sm:$0xff] }
 0x20b   : > { %1254 = vst.msk [vmem:[%s2616_s17 + $0x90] sm:$0xff] %vm1235_vm0, %v1221_v57 }
 0x20d   : > { %v1146_v61 = vpop.xlane.xlu1 %1145  ;;  %v1116_v4 = vpop.xlane.xlu0 %1115 }
 0x20e   : > { %v1222_v50 = vsub.f32 %v1190_v39, %v1146_v61  ;;  %v1207_v47 = vsub.f32 %v1175_v7, %v1116_v4  ;;  %v1186_v61 = vld [vmem:[%s2608_s22 + $0x78] sm:$0xff] }
 0x210   : > { %1255 = vst.msk [vmem:[%s2616_s17 + $0x98] sm:$0xff] %vm1235_vm0, %v1222_v50  ;;  %1240 = vst.msk [vmem:[%s2616_s17 + $0x20] sm:$0xff] %vm1235_vm0, %v1207_v47  ;;  %v1201_v50 = vld [vmem:[%s2608_s22 + $0xf0] sm:$0xff] }
 0x211   : > { %v1118_v6 = vpop.xlane.xlu1 %1117  ;;  %v1148_v22 = vpop.xlane.xlu0 %1147 }
 0x212   : > { %v1208_v1 = vsub.f32 %v1176_v3, %v1118_v6  ;;  %v1223_v56 = vsub.f32 %v1191_v54, %v1148_v22  ;;  %v1202_v6 = vld [vmem:[%s2608_s22 + $0xf8] sm:$0xff] }
 0x214   : > { %1241 = vst.msk [vmem:[%s2616_s17 + $0x28] sm:$0xff] %vm1235_vm0, %v1208_v1  ;;  %1256 = vst.msk [vmem:[%s2616_s17 + $0xa0] sm:$0xff] %vm1235_vm0, %v1223_v56 }
 0x215   : > { %v1150_v37 = vpop.xlane.xlu1 %1149  ;;  %v1120_v59 = vpop.xlane.xlu0 %1119 }
 0x216   : > { %v1224_v20 = vsub.f32 %v1192_v58, %v1150_v37  ;;  %v1209_v52 = vsub.f32 %v1177_v25, %v1120_v59 }
 0x218   : > { %1257 = vst.msk [vmem:[%s2616_s17 + $0xa8] sm:$0xff] %vm1235_vm0, %v1224_v20  ;;  %1242 = vst.msk [vmem:[%s2616_s17 + $0x30] sm:$0xff] %vm1235_vm0, %v1209_v52 }
 0x219   : > { %v1122_v17 = vpop.xlane.xlu1 %1121  ;;  %v1152_v36 = vpop.xlane.xlu0 %1151 }
 0x21a   : > { %v1210_v8 = vsub.f32 %v1178_v46, %v1122_v17  ;;  %v1225_v41 = vsub.f32 %v1193_v55, %v1152_v36 }
 0x21c   : > { %1243 = vst.msk [vmem:[%s2616_s17 + $0x38] sm:$0xff] %vm1235_vm0, %v1210_v8  ;;  %1258 = vst.msk [vmem:[%s2616_s17 + $0xb0] sm:$0xff] %vm1235_vm0, %v1225_v41 }
 0x21d   : > { %v1154_v48 = vpop.xlane.xlu1 %1153  ;;  %v1124_v5 = vpop.xlane.xlu0 %1123 }
 0x21e   : > { %v1226_v10 = vsub.f32 %v1194_v27, %v1154_v48  ;;  %v1211_v53 = vsub.f32 %v1179_v32, %v1124_v5 }
 0x220   : > { %1259 = vst.msk [vmem:[%s2616_s17 + $0xb8] sm:$0xff] %vm1235_vm0, %v1226_v10  ;;  %1244 = vst.msk [vmem:[%s2616_s17 + $0x40] sm:$0xff] %vm1235_vm0, %v1211_v53 }
 0x221   : > { %v1126_v60 = vpop.xlane.xlu1 %1125  ;;  %v1156_v0 = vpop.xlane.xlu0 %1155 }
 0x222   : > { %v1212_v38 = vsub.f32 %v1180_v21, %v1126_v60  ;;  %v1227_v28 = vsub.f32 %v1195_v26, %v1156_v0 }
 0x224   : > { %1245 = vst.msk [vmem:[%s2616_s17 + $0x48] sm:$0xff] %vm1235_vm0, %v1212_v38  ;;  %1260 = vst.msk [vmem:[%s2616_s17 + $0xc0] sm:$0xff] %vm1235_vm0, %v1227_v28 }
 0x225   : > { %v1158_v15 = vpop.xlane.xlu1 %1157  ;;  %v1128_v29 = vpop.xlane.xlu0 %1127 }
 0x226   : > { %v1228_v16 = vsub.f32 %v1196_v51, %v1158_v15  ;;  %v1213_v13 = vsub.f32 %v1181_v19, %v1128_v29 }
 0x228   : > { %1261 = vst.msk [vmem:[%s2616_s17 + $0xc8] sm:$0xff] %vm1235_vm0, %v1228_v16  ;;  %1246 = vst.msk [vmem:[%s2616_s17 + $0x50] sm:$0xff] %vm1235_vm0, %v1213_v13 }
 0x229   : > { %v1130_v18 = vpop.xlane.xlu1 %1129  ;;  %v1160_v31 = vpop.xlane.xlu0 %1159 }
 0x22a   : > { %v1214_v9 = vsub.f32 %v1182_v23, %v1130_v18  ;;  %v1229_v62 = vsub.f32 %v1197_v12, %v1160_v31 }
 0x22c   : > { %1247 = vst.msk [vmem:[%s2616_s17 + $0x58] sm:$0xff] %vm1235_vm0, %v1214_v9  ;;  %1262 = vst.msk [vmem:[%s2616_s17 + $0xd0] sm:$0xff] %vm1235_vm0, %v1229_v62 }
 0x22d   : > { %v1162_v34 = vpop.xlane.xlu1 %1161  ;;  %v1132_v44 = vpop.xlane.xlu0 %1131 }
 0x22e   : > { %v1230_v49 = vsub.f32 %v1198_v33, %v1162_v34  ;;  %v1215_v45 = vsub.f32 %v1183_v2, %v1132_v44 }
 0x230   : > { %1263 = vst.msk [vmem:[%s2616_s17 + $0xd8] sm:$0xff] %vm1235_vm0, %v1230_v49  ;;  %1248 = vst.msk [vmem:[%s2616_s17 + $0x60] sm:$0xff] %vm1235_vm0, %v1215_v45 }
 0x231   : > { %v1134_v42 = vpop.xlane.xlu1 %1133  ;;  %v1164_v11 = vpop.xlane.xlu0 %1163 }
 0x232   : > { %v1216_v63 = vsub.f32 %v1184_v35, %v1134_v42  ;;  %v1231_v14 = vsub.f32 %v1199_v24, %v1164_v11 }
 0x234   : > { %1249 = vst.msk [vmem:[%s2616_s17 + $0x68] sm:$0xff] %vm1235_vm0, %v1216_v63  ;;  %1264 = vst.msk [vmem:[%s2616_s17 + $0xe0] sm:$0xff] %vm1235_vm0, %v1231_v14 }
 0x235   : > { %v1166_v40 = vpop.xlane.xlu1 %1165  ;;  %v1136_v39 = vpop.xlane.xlu0 %1135 }
 0x236   : > { %v1232_v57 = vsub.f32 %v1200_v43, %v1166_v40  ;;  %v1217_v7 = vsub.f32 %v1185_v30, %v1136_v39 }
 0x238   : > { %1265 = vst.msk [vmem:[%s2616_s17 + $0xe8] sm:$0xff] %vm1235_vm0, %v1232_v57  ;;  %1250 = vst.msk [vmem:[%s2616_s17 + $0x70] sm:$0xff] %vm1235_vm0, %v1217_v7 }
 0x239   : > { %v1138_v4 = vpop.xlane.xlu1 %1137  ;;  %v1168_v3 = vpop.xlane.xlu0 %1167 }
 0x23a   : > { %v1218_v47 = vsub.f32 %v1186_v61, %v1138_v4  ;;  %v1233_v54 = vsub.f32 %v1201_v50, %v1168_v3 }
 0x23c   : > { %1251 = vst.msk [vmem:[%s2616_s17 + $0x78] sm:$0xff] %vm1235_vm0, %v1218_v47  ;;  %1266 = vst.msk [vmem:[%s2616_s17 + $0xf0] sm:$0xff] %vm1235_vm0, %v1233_v54 }
 0x23d   : > { %v1170_v1 = vpop.xlane.xlu1 %1169 }
 0x23e   : > { %v1234_v22 = vsub.f32 %v1202_v6, %v1170_v1 }
 0x240   : > { %1267 = vst.msk [vmem:[%s2616_s17 + $0xf8] sm:$0xff] %vm1235_vm0, %v1234_v22 }
 0x241 PF: > { %p1501_p5 = scmp.ge.s32.totalorder %s1854_s21, 2  ;;  %s1306_s28 = sand.u32 1, %s1842_s18  }
 0x242   : > { %p2762_p9 = scmp.ne.s32.totalorder %s2744_s29, 0  ;;  %s1307_s14 = scalar_lea.sflag [#allocation4], %s1306_s28 }
 0x244   : > { %p1496_p10 = pnand %p1501_p5, %p2762_p9 }
 0x246   : > { %p1497_p11 = pneg %p1496_p10 }
 0x248   : > { %1837 = dma.done.wait (%p1497_p11), %s1307_s14, 4096  }
 0x249   : > { %1839 = vsyncadd (%p1497_p11), %s1307_s14, 4294963200  ;;  %p17_p12 = scmp.ge.s32.totalorder %s1918_s24, 4   ;;  %s2763_s18 = smov %s1846_s19 }
 0x24a   : > { %s2764_s19 = smov %s1850_s20  ;;  %s2765_s20 = smov %s1929_s27 }
 0x24b   : > { %s2766_s21 = smov %s1918_s24  ;;  %19 = sbr.rel (!%p17_p12) target bundleno = 4 (0x4), region = 91 }
 0x250   :  { %1320 = vsyncpa [#allocation3], 1 }
 0x251   :  { %1322 = vsyncpa [#allocation3 + $0x1], 1 }
 0x252   :  { %1323 = vsyncpa [#allocation4], 1 }
 0x253   :  { %1325 = vsyncpa [#allocation4 + $0x1], 1 }

</bundles_post_ra>
